<compile_context>
chip_gen: v5e
topology: v5e:2x2
jax: 0.10.0
libtpu: 0.0.40
codegen_flags: <defaults>
</compile_context>

<pallas_src>
import numpy as np
import jax
import jax.numpy as jnp
from jax.experimental import pallas as pl
from jax.experimental.pallas import tpu as pltpu


def _conv_ps_kernel(x_ref, top_ref, bot_ref, w_ref, o_ref):
    # x_ref  : (Cin, TH*W)   main row-tile, NCHW rows flattened (width on lanes)
    # top_ref: (Cin, W)      image row above the tile (pre-zeroed at the border)
    # bot_ref: (Cin, W)      image row below the tile (pre-zeroed at the border)
    # w_ref  : (Cout, 9*Cin) rows ordered (j, i, c), cols ordered (ky, kx, cin)
    # o_ref  : (Cf, TH, 4*W) fused conv + PixelShuffle(2) tile, last axis = (i, 2w+j)
    Cin, M = x_ref.shape
    W = top_ref.shape[-1]
    TH = M // W
    Cout = w_ref.shape[0]
    Cf = Cout // 4

    # ---- flat zero-padded row strip: [corner0 | top row | tile | bottom row | corner1]
    zcorner = jnp.zeros((Cin, 1), dtype=x_ref.dtype)
    xf = jnp.concatenate(
        [zcorner, top_ref[...], x_ref[...], bot_ref[...], zcorner], axis=-1
    )  # (Cin, M + 2W + 2); element [c, 1 + q] == image[c, row0 - 1 + q // W, q % W]

    # column masks for the +-1 horizontal taps (kill the row-wrap contamination)
    wpos = jax.lax.broadcasted_iota(jnp.int32, (1, M), 1) % W
    not_left = wpos != 0
    not_right = wpos != (W - 1)
    zeros_m = jnp.zeros((1, M), dtype=x_ref.dtype)

    # ---- im2col: 9 static slices of the flat strip, stacked on the leading axis ----
    taps = []
    for ky in range(3):
        for kx in range(3):
            off = ky * W + kx
            tap = xf[:, off:off + M]                      # (Cin, M)
            if kx == 0:
                tap = jnp.where(not_left, tap, zeros_m)
            elif kx == 2:
                tap = jnp.where(not_right, tap, zeros_m)
            taps.append(tap)
    patches = jnp.concatenate(taps, axis=0)               # (9*Cin, M), rows (ky, kx, c)

    # ---- ONE MXU matmul with K = 9*Cin, f32 accumulation ----
    y = jnp.dot(w_ref[...], patches, preferred_element_type=jnp.float32)  # (Cout, M)
    y = y.astype(o_ref.dtype)                              # cast once, before the shuffle

    # ---- bulk fused PixelShuffle(2) epilogue (no per-row loop) ----
    # y rows: o' = j*(2Cf) + i*Cf + c ; cols: m = h*W + w
    y3 = y.T.reshape(TH, W, Cout)                          # (h, w, o')
    s = jnp.stack([y3[:, :, :2 * Cf], y3[:, :, 2 * Cf:]], axis=2)  # (TH, W, 2, 2Cf): (h,w,j,ic)
    s = s.reshape(TH, 2 * W, 2 * Cf)                       # (h, 2w+j, i*Cf + c)
    st = jnp.transpose(s, (0, 2, 1))                       # (h, i*Cf + c, 2w+j)
    u = jnp.concatenate([st[:, :Cf, :], st[:, Cf:, :]], axis=-1)   # (h, c, i*2W + 2w + j)
    o_ref[...] = jnp.transpose(u, (1, 0, 2))               # (c, h, i*2W + 2w + j)


# ----------------------------- tiling / VMEM budgeting -----------------------------

def _round_up(x, m):
    return ((x + m - 1) // m) * m


def _vmem_tile_bytes(shape, itemsize):
    """Physical VMEM footprint: last dim padded to 128 lanes, 2nd-to-last to 8 sublanes."""
    lead = 1
    for d in shape[:-2]:
        lead *= int(d)
    return lead * _round_up(int(shape[-2]), 8) * _round_up(int(shape[-1]), 128) * itemsize


def _estimate_vmem(th, W, Cin, Cout, itemsize):
    Cf = Cout // 4
    M = th * W
    f32 = 4
    b = 2 * _vmem_tile_bytes((Cin, M), itemsize)            # main tile (double-buffered)
    b += 4 * _vmem_tile_bytes((Cin, W), itemsize)           # 2 halo rows x 2 buffers
    b += 2 * _vmem_tile_bytes((Cout, 9 * Cin), itemsize)    # weights (pipeline keeps 2 copies)
    b += 2 * _vmem_tile_bytes((Cf, th, 4 * W), itemsize)    # output tile (double-buffered)
    b += _vmem_tile_bytes((Cin, M + 2 * W + 2), itemsize)   # padded row strip
    b += _vmem_tile_bytes((9 * Cin, M), itemsize)           # im2col patches
    b += _vmem_tile_bytes((Cout, M), f32)                   # matmul result (f32)
    b += _vmem_tile_bytes((M, Cout), itemsize)              # transposed result
    b += 3 * _vmem_tile_bytes((Cf, th, 4 * W), itemsize)    # pixel-shuffle temporaries
    return b


def _vmem_budget_and_limit():
    """Generation-aware working-set budget and scoped VMEM limit."""
    cap = 64 * 1024 * 1024                     # conservative default (v7x: 64 MiB / TC)
    try:
        cap = int(pltpu.get_tpu_info().vmem_capacity_bytes)
    except Exception:
        pass
    budget = min(cap // 3, 40 * 1024 * 1024)          # ~21 MiB on v7x, 40 MiB on v5e/v6e
    limit = min((cap * 3) // 4, 112 * 1024 * 1024)    # 48 MiB on v7x, 96 MiB on v5e/v6e
    return budget, limit, cap


def _pick_tile_h(N, H, W, Cin, Cout, itemsize, budget):
    """Row-tile height: divides H, multiple of 8 with TH*W % 128 == 0 (lane/sublane block
    rules), fits the physical-VMEM budget, and -- when possible -- leaves >= 4 grid steps
    (>= 2 per TensorCore under a megacore split)."""
    cands = [d for d in range(8, H, 8) if H % d == 0 and (d * W) % 128 == 0]
    cands.append(H)                                         # full-height tile: always legal
    fitting = [d for d in cands if _estimate_vmem(d, W, Cin, Cout, itemsize) <= budget]
    # TODO(synk): if even the smallest legal tile exceeds physical VMEM (huge W*Cin),
    # a W-tiled variant would be needed; here we fall back to the smallest legal tile.
    pool = fitting if fitting else [min(cands)]
    pref = [d for d in pool if N * (H // d) >= 4]
    return max(pref) if pref else max(pool)


# ----------------------------------- forward ---------------------------------------

def upsample_forward(x_nchw, w_oihw):
    """Forward of Upsample(n_feat): x (N, n_feat, H, W), w (2*n_feat, n_feat, 3, 3)
    -> (N, n_feat//2, 2H, 2W) in NCHW (PyTorch semantics)."""
    N, Cin, H, W = x_nchw.shape
    Cout = w_oihw.shape[0]
    assert w_oihw.shape == (Cout, Cin, 3, 3)
    assert Cout % 4 == 0
    Cf = Cout // 4
    itemsize = x_nchw.dtype.itemsize

    budget, vmem_limit, cap = _vmem_budget_and_limit()
    TH = _pick_tile_h(N, H, W, Cin, Cout, itemsize, budget)
    nt = H // TH
    # never hand the compiler a limit smaller than what the chosen tile needs
    vmem_limit = int(min(cap - (2 << 20),
                         max(vmem_limit,
                             _estimate_vmem(TH, W, Cin, Cout, itemsize) + (4 << 20))))

    # NCHW stays NCHW: flattening (H, W) -> H*W is a free (bitcast) reshape.
    x_flat = x_nchw.reshape(N, Cin, H * W)

    # Halo rows (one above / one below each row-tile): a 2/TH-sized gather done once in
    # the wrapper; border rows are zeroed here so the kernel needs no masking of its own.
    idx_top = np.maximum(np.arange(nt) * TH - 1, 0)
    idx_bot = np.minimum(np.arange(nt) * TH + TH, H - 1)
    top_valid = jnp.asarray(np.arange(nt) > 0, dtype=x_nchw.dtype)
    bot_valid = jnp.asarray(np.arange(nt) < nt - 1, dtype=x_nchw.dtype)
    top_rows = jnp.take(x_nchw, jnp.asarray(idx_top), axis=2) * top_valid[None, None, :, None]
    bot_rows = jnp.take(x_nchw, jnp.asarray(idx_bot), axis=2) * bot_valid[None, None, :, None]
    top_rows = jnp.transpose(top_rows, (0, 2, 1, 3))        # (N, nt, Cin, W)
    bot_rows = jnp.transpose(bot_rows, (0, 2, 1, 3))        # (N, nt, Cin, W)

    # Weights -> (Cout, 9*Cin) im2col matrix (tiny, done once; in a real model this
    # reordering would be precomputed).  Columns (ky, kx, cin) match the in-kernel tap
    # stacking; rows are reordered (c, i, j) -> (j, i, c) so the PixelShuffle epilogue
    # only needs contiguous slices.
    w_mat = jnp.transpose(w_oihw, (0, 2, 3, 1)).reshape(Cout, 9 * Cin)
    w_mat = (w_mat.reshape(Cf, 2, 2, 9 * Cin)
                  .transpose(2, 1, 0, 3)
                  .reshape(Cout, 9 * Cin))

    out_flat = pl.pallas_call(
        _conv_ps_kernel,
        out_shape=jax.ShapeDtypeStruct((N, Cf, H, 4 * W), x_nchw.dtype),
        grid_spec=pltpu.PrefetchScalarGridSpec(
            num_scalar_prefetch=0,
            grid=(N, nt),
            in_specs=[
                # main row-tile (width on lanes; lane-dense since TH*W % 128 == 0)
                pl.BlockSpec((pl.Squeezed(), Cin, TH * W), lambda n, t: (n, 0, t)),
                # halo rows (pre-clamped / pre-zeroed in the wrapper)
                pl.BlockSpec((pl.Squeezed(), pl.Squeezed(), Cin, W),
                             lambda n, t: (n, t, 0, 0)),
                pl.BlockSpec((pl.Squeezed(), pl.Squeezed(), Cin, W),
                             lambda n, t: (n, t, 0, 0)),
                # weights: constant block index -> fetched once, stays resident.
                # TODO(synk): pipeline_mode=pl.Buffered(1) would drop the second weight
                # buffer (worth ~MBs at large n_feat); kept default for robustness.
                pl.BlockSpec((Cout, 9 * Cin), lambda n, t: (0, 0)),
            ],
            out_specs=pl.BlockSpec((pl.Squeezed(), Cf, TH, 4 * W),
                                   lambda n, t: (n, 0, t, 0)),
        ),
        compiler_params=pltpu.CompilerParams(
            dimension_semantics=("parallel", "parallel"),
            vmem_limit_bytes=vmem_limit,
        ),
    )(x_flat, top_rows, bot_rows, w_mat)

    # Free reshape: (N, Cf, H, (i, 2w+j)) and (N, Cf, 2H, 2W) share the same HBM layout.
    return out_flat.reshape(N, Cf, 2 * H, 2 * W)


if __name__ == "__main__":
    key = jax.random.PRNGKey(0)
    kx, kw = jax.random.split(key)

    n_feat = 4
    N, H, W = 2, 16, 16
    x = jax.random.normal(kx, (N, n_feat, H, W), dtype=jnp.float32)
    # Conv2d weight shape (out_ch, in_ch, 3, 3) = (2*n_feat, n_feat, 3, 3)
    w = jax.random.normal(kw, (2 * n_feat, n_feat, 3, 3), dtype=jnp.float32) * 0.1

    out = jax.jit(upsample_forward)(x, w)
    out = jax.block_until_ready(out)
    assert out.shape == (N, n_feat // 2, 2 * H, 2 * W), out.shape

    # Cross-check against XLA's reference conv + PixelShuffle.
    ref_conv = jax.lax.conv_general_dilated(
        x, w, window_strides=(1, 1), padding="SAME",
        dimension_numbers=("NCHW", "OIHW", "NCHW"),
    )
    Cf = n_feat // 2
    ref = ref_conv.reshape(N, Cf, 2, 2, H, W)
    ref = jnp.transpose(ref, (0, 1, 4, 2, 5, 3)).reshape(N, Cf, 2 * H, 2 * W)
    assert jnp.allclose(out, ref, atol=1e-4, rtol=1e-4), float(jnp.max(jnp.abs(out - ref)))

    print("KERNEL_OK")
</pallas_src>

<mosaic_0001>
module attributes {stable_mosaic.version = 11 : i64} {
  func.func @_conv_ps_kernel(%arg0: i32, %arg1: i32, %arg2: memref<1x4x128xf32, #tpu.memory_space<vmem>>, %arg3: memref<1x1x4x16xf32, #tpu.memory_space<vmem>>, %arg4: memref<1x1x4x16xf32, #tpu.memory_space<vmem>>, %arg5: memref<8x36xf32, #tpu.memory_space<vmem>>, %arg6: memref<1x2x8x64xf32, #tpu.memory_space<vmem>>) attributes {dimension_semantics = [#tpu.dimension_semantics<parallel>, #tpu.dimension_semantics<parallel>], iteration_bounds = array<i64: 2, 2>, scalar_prefetch = 0 : i64, scratch_operands = 0 : i64, tpu.core_type = #tpu.core_type<tc>, window_params = [{transform_indices = @transform_0, window_bounds = array<i64: 1, 4, 128>}, {transform_indices = @transform_1, window_bounds = array<i64: 1, 1, 4, 16>}, {transform_indices = @transform_2, window_bounds = array<i64: 1, 1, 4, 16>}, {pipeline_mode = #tpu.pipeline_mode<synchronous>, transform_indices = @transform_3, window_bounds = array<i64: 8, 36>}, {transform_indices = @transform_4, window_bounds = array<i64: 1, 2, 8, 64>}]} {
    %cst = arith.constant 0.000000e+00 : f32
    %0 = vector.broadcast %cst : f32 to vector<4x1xf32>
    %c0 = arith.constant 0 : index
    %c0_0 = arith.constant 0 : index
    %c0_1 = arith.constant 0 : index
    %c0_2 = arith.constant 0 : index
    %1 = vector.load %arg3[%c0, %c0_0, %c0_1, %c0_2] : memref<1x1x4x16xf32, #tpu.memory_space<vmem>>, vector<1x1x4x16xf32>
    %2 = vector.shape_cast %1 : vector<1x1x4x16xf32> to vector<4x16xf32>
    %c0_3 = arith.constant 0 : index
    %c0_4 = arith.constant 0 : index
    %c0_5 = arith.constant 0 : index
    %3 = vector.load %arg2[%c0_3, %c0_4, %c0_5] : memref<1x4x128xf32, #tpu.memory_space<vmem>>, vector<1x4x128xf32>
    %4 = vector.shape_cast %3 : vector<1x4x128xf32> to vector<4x128xf32>
    %c0_6 = arith.constant 0 : index
    %c0_7 = arith.constant 0 : index
    %c0_8 = arith.constant 0 : index
    %c0_9 = arith.constant 0 : index
    %5 = vector.load %arg4[%c0_6, %c0_7, %c0_8, %c0_9] : memref<1x1x4x16xf32, #tpu.memory_space<vmem>>, vector<1x1x4x16xf32>
    %6 = vector.shape_cast %5 : vector<1x1x4x16xf32> to vector<4x16xf32>
    %7 = tpu.concatenate %0, %2, %4, %6, %0 in 1 : vector<4x1xf32>, vector<4x16xf32>, vector<4x128xf32>, vector<4x16xf32>, vector<4x1xf32> -> vector<4x162xf32>
    %8 = tpu.iota {dimensions = array<i32: 1>} : vector<1x128xi32>
    %c16_i32 = arith.constant 16 : i32
    %c0_i32 = arith.constant 0 : i32
    %9 = arith.cmpi eq, %c16_i32, %c0_i32 : i32
    %c1_i32 = arith.constant 1 : i32
    %10 = arith.select %9, %c1_i32, %c16_i32 : i32
    %11 = vector.broadcast %10 : i32 to vector<1x128xi32>
    %12 = arith.remsi %8, %11 : vector<1x128xi32>
    %c0_i32_10 = arith.constant 0 : i32
    %13 = vector.broadcast %c0_i32_10 : i32 to vector<1x128xi32>
    %14 = arith.cmpi ne, %12, %13 : vector<1x128xi32>
    %c0_i32_11 = arith.constant 0 : i32
    %15 = vector.broadcast %c0_i32_11 : i32 to vector<1x128xi32>
    %16 = arith.cmpi slt, %12, %15 : vector<1x128xi32>
    %c0_i32_12 = arith.constant 0 : i32
    %17 = arith.cmpi slt, %10, %c0_i32_12 : i32
    %18 = vector.broadcast %17 : i1 to vector<1x128xi1>
    %19 = vector.broadcast %18 : vector<1x128xi1> to vector<1x128xi1>
    %20 = arith.xori %16, %19 : vector<1x128xi1>
    %21 = arith.andi %20, %14 : vector<1x128xi1>
    %22 = vector.broadcast %10 : i32 to vector<1x128xi32>
    %23 = arith.addi %12, %22 : vector<1x128xi32>
    %24 = arith.select %21, %23, %12 : vector<1x128xi1>, vector<1x128xi32>
    %c0_i32_13 = arith.constant 0 : i32
    %25 = vector.broadcast %c0_i32_13 : i32 to vector<1x128xi32>
    %26 = arith.cmpi ne, %24, %25 : vector<1x128xi32>
    %c15_i32 = arith.constant 15 : i32
    %27 = vector.broadcast %c15_i32 : i32 to vector<1x128xi32>
    %28 = arith.cmpi ne, %24, %27 : vector<1x128xi32>
    %cst_14 = arith.constant 0.000000e+00 : f32
    %29 = vector.broadcast %cst_14 : f32 to vector<1x128xf32>
    %30 = vector.extract_strided_slice %7 {offsets = [0, 0], sizes = [4, 128], strides = [1, 1]} : vector<4x162xf32> to vector<4x128xf32>
    %31 = vector.shape_cast %26 : vector<1x128xi1> to vector<1x128xi1>
    %32 = vector.broadcast %31 : vector<1x128xi1> to vector<4x128xi1>
    %33 = vector.shape_cast %29 : vector<1x128xf32> to vector<1x128xf32>
    %34 = vector.broadcast %33 : vector<1x128xf32> to vector<4x128xf32>
    %35 = arith.select %32, %30, %34 : vector<4x128xi1>, vector<4x128xf32>
    %36 = vector.extract_strided_slice %7 {offsets = [0, 1], sizes = [4, 128], strides = [1, 1]} : vector<4x162xf32> to vector<4x128xf32>
    %37 = vector.extract_strided_slice %7 {offsets = [0, 2], sizes = [4, 128], strides = [1, 1]} : vector<4x162xf32> to vector<4x128xf32>
    %38 = vector.shape_cast %28 : vector<1x128xi1> to vector<1x128xi1>
    %39 = vector.broadcast %38 : vector<1x128xi1> to vector<4x128xi1>
    %40 = vector.shape_cast %29 : vector<1x128xf32> to vector<1x128xf32>
    %41 = vector.broadcast %40 : vector<1x128xf32> to vector<4x128xf32>
    %42 = arith.select %39, %37, %41 : vector<4x128xi1>, vector<4x128xf32>
    %43 = vector.extract_strided_slice %7 {offsets = [0, 16], sizes = [4, 128], strides = [1, 1]} : vector<4x162xf32> to vector<4x128xf32>
    %44 = vector.shape_cast %26 : vector<1x128xi1> to vector<1x128xi1>
    %45 = vector.broadcast %44 : vector<1x128xi1> to vector<4x128xi1>
    %46 = vector.shape_cast %29 : vector<1x128xf32> to vector<1x128xf32>
    %47 = vector.broadcast %46 : vector<1x128xf32> to vector<4x128xf32>
    %48 = arith.select %45, %43, %47 : vector<4x128xi1>, vector<4x128xf32>
    %49 = vector.extract_strided_slice %7 {offsets = [0, 17], sizes = [4, 128], strides = [1, 1]} : vector<4x162xf32> to vector<4x128xf32>
    %50 = vector.extract_strided_slice %7 {offsets = [0, 18], sizes = [4, 128], strides = [1, 1]} : vector<4x162xf32> to vector<4x128xf32>
    %51 = vector.shape_cast %28 : vector<1x128xi1> to vector<1x128xi1>
    %52 = vector.broadcast %51 : vector<1x128xi1> to vector<4x128xi1>
    %53 = vector.shape_cast %29 : vector<1x128xf32> to vector<1x128xf32>
    %54 = vector.broadcast %53 : vector<1x128xf32> to vector<4x128xf32>
    %55 = arith.select %52, %50, %54 : vector<4x128xi1>, vector<4x128xf32>
    %56 = vector.extract_strided_slice %7 {offsets = [0, 32], sizes = [4, 128], strides = [1, 1]} : vector<4x162xf32> to vector<4x128xf32>
    %57 = vector.shape_cast %26 : vector<1x128xi1> to vector<1x128xi1>
    %58 = vector.broadcast %57 : vector<1x128xi1> to vector<4x128xi1>
    %59 = vector.shape_cast %29 : vector<1x128xf32> to vector<1x128xf32>
    %60 = vector.broadcast %59 : vector<1x128xf32> to vector<4x128xf32>
    %61 = arith.select %58, %56, %60 : vector<4x128xi1>, vector<4x128xf32>
    %62 = vector.extract_strided_slice %7 {offsets = [0, 33], sizes = [4, 128], strides = [1, 1]} : vector<4x162xf32> to vector<4x128xf32>
    %63 = vector.extract_strided_slice %7 {offsets = [0, 34], sizes = [4, 128], strides = [1, 1]} : vector<4x162xf32> to vector<4x128xf32>
    %64 = vector.shape_cast %28 : vector<1x128xi1> to vector<1x128xi1>
    %65 = vector.broadcast %64 : vector<1x128xi1> to vector<4x128xi1>
    %66 = vector.shape_cast %29 : vector<1x128xf32> to vector<1x128xf32>
    %67 = vector.broadcast %66 : vector<1x128xf32> to vector<4x128xf32>
    %68 = arith.select %65, %63, %67 : vector<4x128xi1>, vector<4x128xf32>
    %69 = tpu.concatenate %35, %36, %42, %48, %49, %55, %61, %62, %68 in 0 : vector<4x128xf32>, vector<4x128xf32>, vector<4x128xf32>, vector<4x128xf32>, vector<4x128xf32>, vector<4x128xf32>, vector<4x128xf32>, vector<4x128xf32>, vector<4x128xf32> -> vector<36x128xf32>
    %c0_15 = arith.constant 0 : index
    %c0_16 = arith.constant 0 : index
    %70 = vector.load %arg5[%c0_15, %c0_16] : memref<8x36xf32, #tpu.memory_space<vmem>>, vector<8x36xf32>
    %cst_17 = arith.constant dense<0.000000e+00> : vector<8x128xf32>
    %71 = tpu.matmul %70, %69, %cst_17 {dimension_numbers = #tpu.dot_dimension_numbers<[1], [0], [0], [1], [0, 0, 1, 1], [], []>} : vector<8x36xf32>, vector<36x128xf32>, vector<8x128xf32> -> vector<8x128xf32>
    %72 = tpu.transpose %71, [1, 0] : vector<8x128xf32> -> vector<128x8xf32>
    %73 = vector.shape_cast %72 : vector<128x8xf32> to vector<8x16x8xf32>
    %74 = vector.extract_strided_slice %73 {offsets = [0, 0, 0], sizes = [8, 16, 4], strides = [1, 1, 1]} : vector<8x16x8xf32> to vector<8x16x4xf32>
    %75 = vector.extract_strided_slice %73 {offsets = [0, 0, 4], sizes = [8, 16, 4], strides = [1, 1, 1]} : vector<8x16x8xf32> to vector<8x16x4xf32>
    %76 = vector.shape_cast %74 : vector<8x16x4xf32> to vector<8x16x1x4xf32>
    %77 = vector.shape_cast %75 : vector<8x16x4xf32> to vector<8x16x1x4xf32>
    %78 = tpu.concatenate %76, %77 in 2 : vector<8x16x1x4xf32>, vector<8x16x1x4xf32> -> vector<8x16x2x4xf32>
    %79 = vector.shape_cast %78 : vector<8x16x2x4xf32> to vector<8x32x4xf32>
    %80 = tpu.transpose %79, [0, 2, 1] : vector<8x32x4xf32> -> vector<8x4x32xf32>
    %81 = vector.extract_strided_slice %80 {offsets = [0, 0, 0], sizes = [8, 2, 32], strides = [1, 1, 1]} : vector<8x4x32xf32> to vector<8x2x32xf32>
    %82 = vector.extract_strided_slice %80 {offsets = [0, 2, 0], sizes = [8, 2, 32], strides = [1, 1, 1]} : vector<8x4x32xf32> to vector<8x2x32xf32>
    %83 = tpu.concatenate %81, %82 in 2 : vector<8x2x32xf32>, vector<8x2x32xf32> -> vector<8x2x64xf32>
    %84 = tpu.transpose %83, [1, 0, 2] : vector<8x2x64xf32> -> vector<2x8x64xf32>
    %c0_18 = arith.constant 0 : index
    %c0_19 = arith.constant 0 : index
    %c0_20 = arith.constant 0 : index
    %c0_21 = arith.constant 0 : index
    %85 = vector.load %arg6[%c0_18, %c0_19, %c0_20, %c0_21] : memref<1x2x8x64xf32, #tpu.memory_space<vmem>>, vector<1x2x8x64xf32>
    %86 = vector.shape_cast %85 : vector<1x2x8x64xf32> to vector<2x8x64xf32>
    %87 = vector.shape_cast %84 : vector<2x8x64xf32> to vector<1x2x8x64xf32>
    tpu.vector_store %arg6[%c0_18, %c0_19, %c0_20, %c0_21], %87 {strides = array<i32>} : memref<1x2x8x64xf32, #tpu.memory_space<vmem>>, vector<1x2x8x64xf32>,
    return
  }
  func.func @transform_0(%arg0: i32, %arg1: i32) -> (i32, i32, i32) {
    %c0_i32 = arith.constant 0 : i32
    %c0_i32_0 = arith.constant 0 : i32
    return %arg0, %c0_i32, %arg1 : i32, i32, i32
  }
  func.func @transform_1(%arg0: i32, %arg1: i32) -> (i32, i32, i32, i32) {
    %c0_i32 = arith.constant 0 : i32
    %c0_i32_0 = arith.constant 0 : i32
    %c0_i32_1 = arith.constant 0 : i32
    return %arg0, %arg1, %c0_i32, %c0_i32_0 : i32, i32, i32, i32
  }
  func.func @transform_2(%arg0: i32, %arg1: i32) -> (i32, i32, i32, i32) {
    %c0_i32 = arith.constant 0 : i32
    %c0_i32_0 = arith.constant 0 : i32
    %c0_i32_1 = arith.constant 0 : i32
    return %arg0, %arg1, %c0_i32, %c0_i32_0 : i32, i32, i32, i32
  }
  func.func @transform_3(%arg0: i32, %arg1: i32) -> (i32, i32) {
    %c0_i32 = arith.constant 0 : i32
    %c0_i32_0 = arith.constant 0 : i32
    %c0_i32_1 = arith.constant 0 : i32
    return %c0_i32, %c0_i32_0 : i32, i32
  }
  func.func @transform_4(%arg0: i32, %arg1: i32) -> (i32, i32, i32, i32) {
    %c0_i32 = arith.constant 0 : i32
    %c0_i32_0 = arith.constant 0 : i32
    %c0_i32_1 = arith.constant 0 : i32
    return %arg0, %c0_i32, %arg1, %c0_i32_0 : i32, i32, i32, i32
  }
}

</mosaic_0001>

<bundles_post_ra>
// kernel: upsample_forward.1
= control target key start
LH: loop header
LB: loop body
LE: loop exit
PB: predicated region body
PF: predicated region fallthrough
CT: control target
= control target key end

     0   :  { %s2389_s15 = smov 0   ;;  %s2391_s16 = smov 0   ;;  %s3493_s0 = inlined_call_operand.vmem [shape: f32[2,4,256], index: 0, kind: input, shape index: {}]   ;;  %s3494_s1 = inlined_call_operand.vmem [shape: f32[2,2,4,16], index: 1, kind: input, shape index: {}]   ;;  %s3495_s2 = inlined_call_operand.vmem [shape: f32[2,2,4,16], index: 2, kind: input, shape index: {}]   ;;  %s3496_s3 = inlined_call_operand.vmem [shape: f32[8,36], index: 3, kind: input, shape index: {}]   ;;  %s3497_s4 = inlined_call_operand.vmem [shape: f32[2,2,16,64], index: 4, kind: output, shape index: {}]  }
   0x1   :  { %s2393_s17 = smov 0   ;;  %s2395_s18 = smov 0  }
   0x2   :  { %s2397_s19 = smov 0   ;;  %s2399_s20 = smov 0  }
   0x3   :  { %s2401_s21 = smov 0  }
   0x4 LB: > { %s23_s22 = sadd.s32 1, %s2340_s19  ;;  %s26_s23 = sadd.s32 1, %s2344_s20  ;;  %s2348_s21 = sphi %s2401_s21, %s14_s21   ;;  %s2344_s20 = sphi %s2399_s20, %s3536_s20   ;;  %s2340_s19 = sphi %s2397_s19, %s3535_s19   ;;  %s2336_s18 = sphi %s2395_s18, %s3534_s18   ;;  %s2332_s17 = sphi %s2393_s17, %s3533_s17   ;;  %s2328_s16 = sphi %s2391_s16, %s3532_s16   ;;  %s2324_s15 = sphi %s2389_s15, %s3531_s15  }
   0x5   : > { %p24_p0 = scmp.ge.s32.totalorder %s23_s22, 2  ;;  %s2169_s24 = sadd.s32 4294967295, %s2348_s21  }
   0x6   : > { %p150_p1 = scmp.ne.s32.totalorder %s2328_s16, %s2324_s15  ;;  %p151_p2 = scmp.eq.s32.totalorder %s2169_s24, 3 }
   0x7   : > { %s3538_s22 = smov (%p24_p0, %s23_s22), 0  ;;  %s3540_s23 = smov (!%p24_p0, %s26_s23), %s2344_s20 }
   0x8   : > { %s136_s25 = ssub.s32 %s2340_s19, %s3538_s22  ;;  %p28_p3 = scmp.ge.s32.totalorder %s3540_s23, 2 }
   0x9   : > { %p2173_p4 = scmp.ge.s32.totalorder %s2348_s21, 1  ;;  %p2435_p5 = por %p151_p2, %p150_p1 }
   0xa   : > { %p211_p6 = scmp.lt.s32.totalorder %s2348_s21, 5  ;;  %s3542_s23 = smov (%p28_p3, %s3540_s23), 0 }
   0xb   : > { %s135_s27 = ssub.s32 %s2344_s20, %s3542_s23  ;;  %s140_s29 = sadd.s32 1, %s2328_s16 }
   0xc   : > { %p212_p7 = pnand %p2173_p4, %p211_p6  ;;  %s137_s28 = sor.u32 %s136_s25, %s135_s27 }
   0xd   : > { %p138_p8 = scmp.eq.s32.totalorder %s137_s28, 0  ;;  %p255_p9 = scmp.lt.s32.totalorder (!%p212_p7), %s2336_s18, 1 }
   0xe   : > { %215 = sbr.rel (%p212_p7) target bundleno = 1593 (0x639), region = 36  ;;  %p257_p10 = scmp.lt.s32.totalorder (!%p212_p7), %s2332_s17, 1 }
   0xf   : > { %s2446_s30 = scalar_select %p138_p8, %s2328_s16, %s140_s29  }
  0x10   : > { %s2350_s25 = smov (!%p212_p7), 1   ;;  %s2351_s27 = smov (!%p212_p7), 17  }
  0x11   : > { %s2356_s10 = smov (!%p212_p7), 127   ;;  %s2357_s11 = smov (!%p212_p7), 94  }
  0x12   : > { %s2359_s13 = smov (!%p212_p7), 95   ;;  %s252_s28 = sand.u32 (!%p212_p7), 1, %s2324_s15  }
  0x13   : > { %s256_s5 = scalar_select %p255_p9, %s2336_s18, 1  ;;  %vm294_vm0 = vcmask 7168   ;;  %vm296_vm1 = vcmask 138240   ;;  %vm299_vm2 = vcmask 269312   ;;  %v301_v17 = vlaneseq  ;;  %v398_v61 = vld [vmem:[%s3496_s3] sm:$0xff] }
  0x14   : > { %s258_s6 = scalar_select %p257_p10, %s2332_s17, 1  ;;  %vm352_vm3 = vcmask 785408   ;;  %vm360_vm4 = vcmask 769024   ;;  %vm390_vm5 = vcmask 777216   ;;  %vm344_vm7 = vcmask 900096  }
  0x15   : > { %s2175_s7 = sshll.u32 %s256_s5, 1  ;;  %v302_v19 = vand.u32 127, %v301_v17  ;;  %vm393_vm9 = vcmask 1043456   ;;  %vm336_vm10 = vcmask 916480   ;;  %vm328_vm11 = vcmask 1031168   ;;  %s2174_s29 = sshll.u32 %s252_s28, 4 }
  0x16   : > { %s260_s8 = sadd.s32 %s2175_s7, %s258_s6  ;;  %s2352_s6 = smov 96   ;;  %vm380_vm12 = vcmask 908288   ;;  %vm370_vm13 = vcmask 1039360   ;;  %vm399_vm14 = vcmask 293888   ;;  %vm1210_vm15 = vcmask 1040384  }
  0x17   : > { %s2176_s9 = sshll.u32 %s260_s8, 2  ;;  %s2353_s7 = smov 112   ;;  %v307_v24 = vand.u32 15, %v302_v19 }
  0x18   : > { %s270_s12 = scalar_lea.vmem %s3494_s1, %s2176_s9  ;;  %s278_s24 = scalar_lea.vmem %s3495_s2, %s2176_s9 }
  0x19   : > { %v279_v0 = vld [vmem:[%s270_s12] sm:$0xf]  ;;  %s262_s5 = scalar_lea.vmem %s3493_s0, %s2176_s9  ;;  %s2354_s8 = smov 126   ;;  %vm2466_vm6 = vcmp.ne.s32.totalorder %v307_v24, 15  ;;  %vm2470_vm8 = vcmp.ne.s32.totalorder %v307_v24, 0 }
  0x1a   : > { %v281_v1 = vld [vmem:[%s278_s24] sm:$0xf]  ;;  %283 = vrot.lane.b32.xlu0 %v279_v0, %s2350_s25  ;;  %s2355_s9 = smov 110   ;;  %s2358_s12 = smov 111  }
  0x1b   : > { %291 = vrot.lane.b32.xlu1 %v281_v1, %s2351_s27  ;;  %v280_v2 = vld [vmem:[%s262_s5] sm:$0xf]  ;;  %s2360_s25 = smov 124   ;;  %s254_s5 = scalar_lea.vmem [#allocation2], %s2174_s29 }
  0x1c   : > { %s2184_s15 = sshll.u32 (%p2435_p5), %s2336_s18, 2 }
  0x22   : > { %287 = vrot.lane.b32.xlu0 %v280_v2, %s2351_s27  ;;  %s2361_s27 = smov 32  }
  0x8c   : > { %v284_v3 = vpop.permute.xlu0 %283 }
  0x8d   : > { %v292_v4 = vpop.permute.xlu1 %291  ;;  %v295_v5 = vsel %vm294_vm0, 0.0, %v284_v3  ;;  %vm1962_vm0 = vcmask 261120  }
  0x94   : > { %v288_v6 = vpop.permute.xlu0 %287 }
  0x95   : > { %v2461_v7 = vsel %vm296_vm1, %v295_v5, %v288_v6  ;;  %v298_v8 = vsel %vm296_vm1, %v288_v6, %v292_v4  ;;  %vm1972_vm1 = vcmask 1047556  }
  0x96   : > { %v300_v9 = vsel %vm299_vm2, %v298_v8, 0.0  ;;  %v364_v11 = vrot.slane %v2461_v7, 4  ;;  %v319_v60 = vsel %vm2470_vm8, %v2461_v7, 0.0  ;;  %vm2012_vm2 = vcmask 523264  }
  0x97   : > { %v2274_v10 = vpack.i.bf16 %v300_v9, %v2461_v7  ;;  %v365_v12 = vrot.slane %v300_v9, 4 }
  0x99   : > { %2275 = vrot.lane.b32.xlu0 %v2274_v10, %s2352_s6  ;;  %2265 = vrot.lane.b32.xlu2 %v2274_v10, %s2353_s7  ;;  %v2284_v13 = vpack.i.bf16 %v365_v12, %v364_v11  ;;  %s2023_s6 = sadd.s32 (%p2435_p5), %s2332_s17, %s2184_s15 }
  0x9a   : > { %2260 = vrot.lane.b32.xlu1 %v2274_v10, %s2354_s8  ;;  %s2185_s7 = sshll.u32 (%p2435_p5), %s2023_s6, 3 }
  0xa1   : > { %2270 = vrot.lane.b32.xlu2 %v2274_v10, %s2355_s9  ;;  %2285 = vrot.lane.b32.xlu0 %v2284_v13, %s2356_s10  ;;  %s2025_s10 = scalar_lea.vmem (%p2435_p5), %s3497_s4, %s2185_s7 }
  0xa2   : > { %356 = vrot.lane.b32.xlu1 %v2461_v7, %s2357_s11 }
  0xa9   : > { %358 = vrot.lane.b32.xlu2 %v300_v9, %s2357_s11 }
  0xaa   : > { %2280 = vrot.lane.b32.xlu1 %v2274_v10, %s2358_s12 }
  0xb1   : > { %2290 = vrot.lane.b32.xlu2 %v2284_v13, %s2359_s13 }
  0xf3   : > { %v2266_v14 = vpop.permute.xlu2 %2265 }
  0xf4   : > { %v2268_v30 = vunpack.i.h.bf16 %v2266_v14  ;;  %v2267_v34 = vunpack.i.l.bf16 %v2266_v14 }
  0xf6   : > { %v337_v43 = vsel %vm336_vm10, %v2267_v34, %v2268_v30 }
  0xf7   : > { %v339_v48 = vsel %vm2470_vm8, %v337_v43, 0.0 }
  0xf8   : > { %v374_v57 = vrot.slane %v339_v48, 4 }
  0xfb   : > { %v2271_v15 = vpop.permute.xlu2 %2270 }
  0xfc   : > { %v2273_v31 = vunpack.i.h.bf16 %v2271_v15  ;;  %v2272_v32 = vunpack.i.l.bf16 %v2271_v15 }
  0xfe   : > { %v345_v41 = vsel %vm344_vm7, %v2272_v32, %v2273_v31 }
  0xff   : > { %v347_v45 = vsel %vm2466_vm6, %v345_v41, 0.0 }
 0x100   : > { %v384_v53 = vrot.slane %v347_v45, 4 }
 0x103   : > { %v359_v16 = vpop.permute.xlu2 %358 }
 0x10b   : > { %v2276_v18 = vpop.permute.xlu0 %2275  ;;  %v2291_v23 = vpop.permute.xlu2 %2290 }
 0x10c   : > { %v2261_v20 = vpop.permute.xlu1 %2260  ;;  %v2278_v21 = vunpack.i.h.bf16 %v2276_v18  ;;  %v2277_v22 = vunpack.i.l.bf16 %v2276_v18  ;;  %v2293_v25 = vunpack.i.h.bf16 %v2291_v23  ;;  %v2292_v26 = vunpack.i.l.bf16 %v2291_v23 }
 0x10d   : > { %v2263_v39 = vunpack.i.h.bf16 %v2261_v20  ;;  %v2262_v40 = vunpack.i.l.bf16 %v2261_v20 }
 0x10e   : > { %v353_v27 = vsel %vm352_vm3, %v2277_v22, %v2278_v21  ;;  %v391_v37 = vsel %vm390_vm5, %v2292_v26, %v2293_v25 }
 0x10f   : > { %v355_v36 = vsel %vm2470_vm8, %v353_v27, 0.0  ;;  %v329_v47 = vsel %vm328_vm11, %v2262_v40, %v2263_v39 }
 0x110   : > { %v397_v42 = vsel %vm393_vm9, %v355_v36, %v391_v37  ;;  %v331_v55 = vsel %vm2466_vm6, %v329_v47, 0.0 }
 0x111   : > { %v395_v59 = vsel %vm393_vm9, %v331_v55, %v374_v57 }
 0x113   : > { %v2286_v44 = vpop.permute.xlu0 %2285 }
 0x114   : > { %v357_v33 = vpop.permute.xlu1 %356  ;;  %v2288_v49 = vunpack.i.h.bf16 %v2286_v44  ;;  %v2287_v50 = vunpack.i.l.bf16 %v2286_v44 }
 0x115   : > { %v361_v35 = vsel %vm360_vm4, %v357_v33, %v359_v16 }
 0x116   : > { %v363_v38 = vsel %vm2466_vm6, %v361_v35, 0.0  ;;  %v371_v58 = vsel %vm370_vm13, %v2287_v50, %v2288_v49 }
 0x117   : > { %2181 = vmatpush.msk.msra.mxu0 %vm393_vm9, %v363_v38  ;;  %v394_v62 = vsel %vm393_vm9, %v319_v60, %v371_v58 }
 0x119   : > { %418 = vmatpush.msra.mxu0 %v397_v42 }
 0x11c   : > { %v2281_v46 = vpop.permute.xlu1 %2280 }
 0x11d   : > { %v2283_v51 = vunpack.i.h.bf16 %v2281_v46  ;;  %v2282_v52 = vunpack.i.l.bf16 %v2281_v46 }
 0x11f   : > { %v381_v54 = vsel %vm380_vm12, %v2282_v52, %v2283_v51 }
 0x120   : > { %v396_v56 = vsel %vm393_vm9, %v381_v54, %v384_v53 }
 0x121   : > { %419 = vmatpush.msra.mxu0 %v396_v56 }
 0x123   : > { %420 = vmatpush.msra.mxu0 %v395_v59 }
 0x125   : > { %421 = vmatpush.msra.mxu0 %v394_v62 }
 0x126   : > { %2182 = vmatmul.msk.f32.vlgmr.msra.gmra.mxu0 %vm399_vm14, %v398_v61 }
 0x1a3   : > { %v423_v63 = vpop.f32.mrf.mxu0 }
 0x1a4   : > { %426 = vxpose.xlu0.b32.start.end [1/1] (short) %v423_v63, 128 }
 0x248   : > { %v2496_v0 = vpop.trf.xlu0 }
 0x249   : > { %v698_v1 = vperm.slane %v2496_v0, 0  ;;  %v474_v2 = vrot.slane %v2496_v0, 1  ;;  %v475_v4 = vrot.slane %v2496_v0, 2  ;;  %v476_v5 = vrot.slane %v2496_v0, 3 }
 0x24a   : > { %v477_v9 = vrot.slane %v2496_v0, 4  ;;  %v478_v10 = vrot.slane %v2496_v0, 5  ;;  %v479_v14 = vrot.slane %v2496_v0, 6  ;;  %v480_v15 = vrot.slane %v2496_v0, 7 }
 0x24b   : > { %826 = vrot.lane.b32.xlu1 %v698_v1, %s2360_s25  ;;  %v699_v3 = vperm.slane %v474_v2, 0  ;;  %v700_v7 = vperm.slane %v475_v4, 0  ;;  %v701_v8 = vperm.slane %v476_v5, 0 }
 0x24c   : > { %v702_v12 = vperm.slane %v477_v9, 0  ;;  %v703_v13 = vperm.slane %v478_v10, 0  ;;  %v704_v17 = vperm.slane %v479_v14, 0  ;;  %v705_v18 = vperm.slane %v480_v15, 0 }
 0x24d   : > { %828 = vrot.lane.b32.xlu2 %v699_v3, %s2360_s25 }
 0x250   : > { %v2506_v6 = vpop.trf.xlu0 }
 0x251   : > { %v481_v19 = vrot.slane %v2506_v6, 1  ;;  %v706_v20 = vperm.slane %v2506_v6, 0  ;;  %v483_v23 = vrot.slane %v2506_v6, 3  ;;  %v484_v24 = vrot.slane %v2506_v6, 4 }
 0x252   : > { %v485_v28 = vrot.slane %v2506_v6, 5  ;;  %v486_v29 = vrot.slane %v2506_v6, 6  ;;  %v487_v33 = vrot.slane %v2506_v6, 7  ;;  %v482_v38 = vrot.slane %v2506_v6, 2 }
 0x253   : > { %830 = vrot.lane.b32.xlu1 %v700_v7, %s2360_s25  ;;  %v707_v22 = vperm.slane %v481_v19, 0  ;;  %v709_v26 = vperm.slane %v483_v23, 0  ;;  %v710_v27 = vperm.slane %v484_v24, 0 }
 0x254   : > { %v711_v31 = vperm.slane %v485_v28, 0  ;;  %v712_v32 = vperm.slane %v486_v29, 0  ;;  %v713_v35 = vperm.slane %v487_v33, 0  ;;  %v708_v41 = vperm.slane %v482_v38, 0 }
 0x255   : > { %832 = vrot.lane.b32.xlu2 %v701_v8, %s2360_s25 }
 0x258   : > { %v2516_v11 = vpop.trf.xlu0 }
 0x259   : > { %v714_v36 = vperm.slane %v2516_v11, 0  ;;  %v488_v37 = vrot.slane %v2516_v11, 1  ;;  %v489_v40 = vrot.slane %v2516_v11, 2  ;;  %v490_v45 = vrot.slane %v2516_v11, 3 }
 0x25a   : > { %v491_v47 = vrot.slane %v2516_v11, 4  ;;  %v492_v51 = vrot.slane %v2516_v11, 5  ;;  %v493_v53 = vrot.slane %v2516_v11, 6  ;;  %v494_v58 = vrot.slane %v2516_v11, 7 }
 0x25b   : > { %834 = vrot.lane.b32.xlu1 %v702_v12, %s2360_s25  ;;  %v715_v39 = vperm.slane %v488_v37, 0  ;;  %v716_v44 = vperm.slane %v489_v40, 0  ;;  %v717_v48 = vperm.slane %v490_v45, 0 }
 0x25c   : > { %v718_v50 = vperm.slane %v491_v47, 0  ;;  %v719_v55 = vperm.slane %v492_v51, 0  ;;  %v720_v57 = vperm.slane %v493_v53, 0  ;;  %v721_v60 = vperm.slane %v494_v58, 0 }
 0x25d   : > { %836 = vrot.lane.b32.xlu2 %v703_v13, %s2360_s25 }
 0x260   : > { %v2526_v16 = vpop.trf.xlu0 }
 0x261   : > { %v722_v61 = vperm.slane %v2526_v16, 0  ;;  %v495_v63 = vrot.slane %v2526_v16, 1  ;;  %v496_v8 = vrot.slane %v2526_v16, 2 }
 0x263   : > { %838 = vrot.lane.b32.xlu1 %v704_v17, %s2360_s25  ;;  %v723_v7 = vperm.slane %v495_v63, 0  ;;  %v724_v17 = vperm.slane %v496_v8, 0 }
 0x265   : > { %840 = vrot.lane.b32.xlu2 %v705_v18, %s2360_s25  ;;  %v497_v18 = vrot.slane %v2526_v16, 3 }
 0x268   : > { %v2536_v21 = vpop.trf.xlu0 }
 0x26b   : > { %842 = vrot.lane.b32.xlu1 %v706_v20, %s2360_s25 }
 0x26d   : > { %844 = vrot.lane.b32.xlu2 %v707_v22, %s2360_s25 }
 0x270   : > { %v2544_v25 = vpop.trf.xlu0 }
 0x273   : > { %848 = vrot.lane.b32.xlu1 %v709_v26, %s2360_s25 }
 0x275   : > { %850 = vrot.lane.b32.xlu2 %v710_v27, %s2360_s25 }
 0x278   : > { %v2554_v30 = vpop.trf.xlu0 }
 0x27b   : > { %852 = vrot.lane.b32.xlu1 %v711_v31, %s2360_s25  ;;  %v725_v31 = vperm.slane %v497_v18, 0 }
 0x27d   : > { %854 = vrot.lane.b32.xlu2 %v712_v32, %s2360_s25 }
 0x280   : > { %v2563_v34 = vpop.trf.xlu0 }
 0x283   : > { %856 = vrot.lane.b32.xlu1 %v713_v35, %s2360_s25 }
 0x285   : > { %858 = vrot.lane.b32.xlu2 %v714_v36, %s2360_s25  ;;  %v499_v36 = vrot.slane %v2526_v16, 5 }
 0x288   : > { %v2577_v42 = vpop.trf.xlu0 }
 0x289   : > { %v532_v43 = vrot.slane %v2577_v42, 3  ;;  %v535_v49 = vrot.slane %v2577_v42, 6 }
 0x28a   : > { %846 = vrot.lane.b32.xlu0 %v708_v41, %s2360_s25  ;;  %v500_v41 = vrot.slane %v2526_v16, 6 }
 0x28b   : > { %860 = vrot.lane.b32.xlu1 %v715_v39, %s2360_s25  ;;  %v765_v46 = vperm.slane %v532_v43, 0  ;;  %v768_v52 = vperm.slane %v535_v49, 0 }
 0x28d   : > { %862 = vrot.lane.b32.xlu2 %v716_v44, %s2360_s25 }
 0x290   : > { %v2601_v54 = vpop.trf.xlu0 }
 0x291   : > { %v537_v56 = vrot.slane %v2601_v54, 1  ;;  %v540_v62 = vrot.slane %v2601_v54, 4  ;;  %v543_v13 = vrot.slane %v2601_v54, 7 }
 0x292   : > { %960 = vrot.lane.b32.xlu0 %v765_v46, %s2360_s25  ;;  %v727_v46 = vperm.slane %v499_v36, 0 }
 0x293   : > { %864 = vrot.lane.b32.xlu1 %v717_v48, %s2360_s25  ;;  %v771_v59 = vperm.slane %v537_v56, 0  ;;  %v774_v1 = vperm.slane %v540_v62, 0  ;;  %v777_v20 = vperm.slane %v543_v13, 0 }
 0x295   : > { %866 = vrot.lane.b32.xlu2 %v718_v50, %s2360_s25  ;;  %v728_v50 = vperm.slane %v500_v41, 0 }
 0x298   : > { %v2640_v26 = vpop.trf.xlu0 }
 0x299   : > { %v545_v32 = vrot.slane %v2640_v26, 2  ;;  %v3504_v48 = vrot.slane %v2640_v26, 5 }
 0x29a   : > { %966 = vrot.lane.b32.xlu0 %v768_v52, %s2360_s25 }
 0x29b   : > { %868 = vrot.lane.b32.xlu1 %v719_v55, %s2360_s25  ;;  %v501_v55 = vrot.slane %v2526_v16, 7 }
 0x29d   : > { %870 = vrot.lane.b32.xlu2 %v720_v57, %s2360_s25  ;;  %v783_v57 = vperm.slane %v3504_v48, 0 }
 0x2a2   : > { %972 = vrot.lane.b32.xlu0 %v771_v59, %s2360_s25 }
 0x2a3   : > { %872 = vrot.lane.b32.xlu1 %v721_v60, %s2360_s25 }
 0x2a5   : > { %874 = vrot.lane.b32.xlu2 %v722_v61, %s2360_s25  ;;  %v729_v61 = vperm.slane %v501_v55, 0 }
 0x2a7   : > { %v829_v3 = vpop.permute.xlu2 %828 }
 0x2a8   : > { %v1212_v12 = vsel %vm1210_vm15, %v474_v2, %v829_v3  ;;  %v498_v2 = vrot.slane %v2526_v16, 4  ;;  %v2681_v3 = vpop.trf.xlu0 }
 0x2a9   : > { %1469 = vst [vmem:[#allocation1 + $0x1] ss:$4 sm:$0xff] %v1212_v12 }
 0x2aa   : > { %978 = vrot.lane.b32.xlu0 %v774_v1, %s2360_s25  ;;  %v726_v35 = vperm.slane %v498_v2, 0  ;;  %v730_v1 = vperm.slane %v2536_v21, 0 }
 0x2ab   : > { %876 = vrot.lane.b32.xlu1 %v723_v7, %s2360_s25  ;;  %v502_v7 = vrot.slane %v2536_v21, 1 }
 0x2ad   : > { %878 = vrot.lane.b32.xlu2 %v724_v17, %s2360_s25  ;;  %v786_v17 = vperm.slane %v2681_v3, 0 }
 0x2af   : > { %v833_v22 = vpop.permute.xlu2 %832 }
 0x2b0   : > { %v1214_v27 = vsel %vm1210_vm15, %v476_v5, %v833_v22  ;;  %v780_v5 = vperm.slane %v545_v32, 0  ;;  %v731_v22 = vperm.slane %v502_v7, 0 }
 0x2b1   : > { %1473 = vst [vmem:[#allocation1 + $0x3] ss:$4 sm:$0xff] %v1214_v27  ;;  %v503_v27 = vrot.slane %v2536_v21, 2 }
 0x2b2   : > { %984 = vrot.lane.b32.xlu0 %v777_v20, %s2360_s25 }
 0x2b3   : > { %880 = vrot.lane.b32.xlu1 %v725_v31, %s2360_s25  ;;  %v3502_v31 = vrot.slane %v2681_v3, 3 }
 0x2b5   : > { %882 = vrot.lane.b32.xlu2 %v726_v35, %s2360_s25  ;;  %v732_v35 = vperm.slane %v503_v27, 0 }
 0x2b7   : > { %v837_v39 = vpop.permute.xlu2 %836 }
 0x2b8   : > { %v1216_v44 = vsel %vm1210_vm15, %v478_v10, %v837_v39 }
 0x2b9   : > { %1477 = vst [vmem:[#allocation1 + $0x21] ss:$4 sm:$0xff] %v1216_v44 }
 0x2ba   : > { %990 = vrot.lane.b32.xlu0 %v780_v5, %s2360_s25 }
 0x2bb   : > { %884 = vrot.lane.b32.xlu1 %v727_v46, %s2360_s25 }
 0x2bd   : > { %v827_v52 = vpop.permute.xlu1 %826  ;;  %886 = vrot.lane.b32.xlu2 %v728_v50, %s2360_s25  ;;  %v789_v50 = vperm.slane %v3502_v31, 0 }
 0x2be   : > { %v1211_v10 = vsel %vm1210_vm15, %v2496_v0, %v827_v52 }
 0x2bf   : > { %1467 = vst [vmem:[#allocation1] ss:$4 sm:$0xff] %v1211_v10  ;;  %v841_v59 = vpop.permute.xlu2 %840  ;;  %v505_v10 = vrot.slane %v2536_v21, 4 }
 0x2c0   : > { %v1218_v60 = vsel %vm1210_vm15, %v480_v15, %v841_v59  ;;  %v3501_v59 = vrot.slane %v2681_v3, 6 }
 0x2c1   : > { %1481 = vst [vmem:[#allocation1 + $0x23] ss:$4 sm:$0xff] %v1218_v60 }
 0x2c2   : > { %996 = vrot.lane.b32.xlu0 %v783_v57, %s2360_s25 }
 0x2c3   : > { %888 = vrot.lane.b32.xlu1 %v729_v61, %s2360_s25  ;;  %v506_v61 = vrot.slane %v2536_v21, 5 }
 0x2c5   : > { %v831_v12 = vpop.permute.xlu1 %830  ;;  %890 = vrot.lane.b32.xlu2 %v730_v1, %s2360_s25 }
 0x2c6   : > { %v1213_v15 = vsel %vm1210_vm15, %v475_v4, %v831_v12  ;;  %v504_v4 = vrot.slane %v2536_v21, 3  ;;  %v792_v12 = vperm.slane %v3501_v59, 0  ;;  %v514_v59 = vrot.slane %v2544_v25, 6 }
 0x2c7   : > { %1471 = vst [vmem:[#allocation1 + $0x2] ss:$4 sm:$0xff] %v1213_v15  ;;  %v845_v20 = vpop.permute.xlu2 %844 }
 0x2c8   : > { %v1220_v44 = vsel %vm1210_vm15, %v481_v19, %v845_v20  ;;  %v733_v57 = vperm.slane %v504_v4, 0  ;;  %v2717_v19 = vpop.trf.xlu0  ;;  %v735_v20 = vperm.slane %v506_v61, 0  ;;  %v744_v31 = vperm.slane %v514_v59, 0 }
 0x2ca   : > { %1002 = vrot.lane.b32.xlu0 %v786_v17, %s2360_s25  ;;  %v507_v17 = vrot.slane %v2536_v21, 6 }
 0x2cb   : > { %892 = vrot.lane.b32.xlu1 %v731_v22, %s2360_s25  ;;  %v3500_v22 = vrot.slane %v2717_v19, 1 }
 0x2cc   : > { %v736_v0 = vperm.slane %v507_v17, 0 }
 0x2cd   : > { %v835_v5 = vpop.permute.xlu1 %834  ;;  %894 = vrot.lane.b32.xlu2 %v732_v35, %s2360_s25  ;;  %v508_v35 = vrot.slane %v2536_v21, 7 }
 0x2ce   : > { %v2699_v39 = vld.sshfl [vmem:[#allocation1] sm:$0xff pattern:$0x73625140]  ;;  %v1215_v46 = vsel %vm1210_vm15, %v477_v9, %v835_v5  ;;  %v734_v9 = vperm.slane %v505_v10, 0 }
 0x2cf   : > { %1485 = vst [vmem:[#allocation1 + $0x1] ss:$4 sm:$0xff] %v1220_v44  ;;  %v851_v52 = vpop.permute.xlu2 %850 }
 0x2d0   : > { %1475 = vst [vmem:[#allocation1 + $0x20] ss:$4 sm:$0xff] %v1215_v46  ;;  %v1223_v5 = vsel %vm1210_vm15, %v484_v24, %v851_v52  ;;  %v737_v24 = vperm.slane %v508_v35, 0  ;;  %v738_v52 = vperm.slane %v2544_v25, 0 }
 0x2d2   : > { %1008 = vrot.lane.b32.xlu0 %v789_v50, %s2360_s25  ;;  %v795_v50 = vperm.slane %v3500_v22, 0 }
 0x2d3   : > { %896 = vrot.lane.b32.xlu1 %v733_v57, %s2360_s25  ;;  %v2745_v57 = vpop.trf.xlu0 }
 0x2d5   : > { %v839_v60 = vpop.permute.xlu1 %838  ;;  %898 = vrot.lane.b32.xlu2 %v734_v9, %s2360_s25 }
 0x2d6   : > { %v1217_v1 = vsel %vm1210_vm15, %v479_v14, %v839_v60 }
 0x2d7   : > { %1479 = vst [vmem:[#allocation1 + $0x22] ss:$4 sm:$0xff] %v1217_v1  ;;  %v855_v15 = vpop.permute.xlu2 %854  ;;  %v3498_v1 = vrot.slane %v2717_v19, 4 }
 0x2d8   : > { %v1225_v9 = vsel %vm1210_vm15, %v486_v29, %v855_v15 }
 0x2d9   : > { %v798_v15 = vperm.slane %v3498_v1, 0 }
 0x2da   : > { %1014 = vrot.lane.b32.xlu0 %v792_v12, %s2360_s25  ;;  %v509_v12 = vrot.slane %v2544_v25, 1 }
 0x2db   : > { %900 = vrot.lane.b32.xlu1 %v735_v20, %s2360_s25 }
 0x2dd   : > { %v843_v14 = vpop.permute.xlu1 %842  ;;  %902 = vrot.lane.b32.xlu2 %v736_v0, %s2360_s25 }
 0x2de   : > { %v2739_v44 = vld.sshfl [vmem:[#allocation1 + $0x20] sm:$0xff pattern:$0x73625140]  ;;  %v1219_v46 = vsel %vm1210_vm15, %v2506_v6, %v843_v14  ;;  %v739_v14 = vperm.slane %v509_v12, 0 }
 0x2df   : > { %1488 = vst [vmem:[#allocation1 + $0x20] ss:$4 sm:$0xff] %v1223_v5  ;;  %v2750_v60 = vpop.permute.xlu2 %858  ;;  %v510_v5 = vrot.slane %v2544_v25, 2 }
 0x2e0   : > { %1490 = vst [vmem:[#allocation1 + $0x22] ss:$4 sm:$0xff] %v1225_v9 }
 0x2e1   : > { %1484 = vst [vmem:[#allocation1] ss:$4 sm:$0xff] %v1219_v46  ;;  %v2768_v46 = vpop.trf.xlu0 }
 0x2e2   : > { %1020 = vrot.lane.b32.xlu0 %v795_v50, %s2360_s25  ;;  %v3499_v50 = vrot.slane %v2717_v19, 7 }
 0x2e3   : > { %904 = vrot.lane.b32.xlu1 %v737_v24, %s2360_s25  ;;  %v511_v24 = vrot.slane %v2544_v25, 3 }
 0x2e5   : > { %v849_v20 = vpop.permute.xlu1 %848  ;;  %906 = vrot.lane.b32.xlu2 %v738_v52, %s2360_s25 }
 0x2e6   : > { %v1222_v29 = vsel %vm1210_vm15, %v483_v23, %v849_v20  ;;  %v740_v23 = vperm.slane %v510_v5, 0  ;;  %v801_v20 = vperm.slane %v3499_v50, 0 }
 0x2e7   : > { %1487 = vst [vmem:[#allocation1 + $0x3] ss:$4 sm:$0xff] %v1222_v29  ;;  %v863_v0 = vpop.permute.xlu2 %862 }
 0x2e9   : > { %v2786_v1 = vpop.trf.xlu0 }
 0x2ea   : > { %1026 = vrot.lane.b32.xlu0 %v798_v15, %s2360_s25  ;;  %v512_v15 = vrot.slane %v2544_v25, 4 }
 0x2eb   : > { %908 = vrot.lane.b32.xlu1 %v739_v14, %s2360_s25  ;;  %v741_v14 = vperm.slane %v511_v24, 0 }
 0x2ed   : > { %v853_v9 = vpop.permute.xlu1 %852  ;;  %910 = vrot.lane.b32.xlu2 %v740_v23, %s2360_s25  ;;  %v3503_v23 = vrot.slane %v2745_v57, 2 }
 0x2ee   : > { %v1224_v52 = vsel %vm1210_vm15, %v485_v28, %v853_v9  ;;  %v742_v28 = vperm.slane %v512_v15, 0 }
 0x2ef   : > { %1489 = vst [vmem:[#allocation1 + $0x21] ss:$4 sm:$0xff] %v1224_v52  ;;  %v867_v29 = vpop.permute.xlu2 %866  ;;  %v513_v52 = vrot.slane %v2544_v25, 5 }
 0x2f2   : > { %1032 = vrot.lane.b32.xlu0 %v801_v20, %s2360_s25  ;;  %v804_v20 = vperm.slane %v3503_v23, 0  ;;  %v515_v23 = vrot.slane %v2544_v25, 7 }
 0x2f3   : > { %912 = vrot.lane.b32.xlu1 %v741_v14, %s2360_s25  ;;  %v743_v14 = vperm.slane %v513_v52, 0 }
 0x2f5   : > { %v857_v9 = vpop.permute.xlu1 %856  ;;  %914 = vrot.lane.b32.xlu2 %v742_v28, %s2360_s25  ;;  %v3510_v28 = vrot.slane %v2745_v57, 5 }
 0x2f6   : > { %v1226_v50 = vsel %vm1210_vm15, %v487_v33, %v857_v9 }
 0x2f7   : > { %1491 = vst [vmem:[#allocation1 + $0x23] ss:$4 sm:$0xff] %v1226_v50  ;;  %v871_v22 = vpop.permute.xlu2 %870 }
 0x2f8   : > { %v1233_v6 = vsel %vm1210_vm15, %v493_v53, %v871_v22  ;;  %v1227_v22 = vsel %vm1210_vm15, %v2516_v11, %v2750_v60  ;;  %v3509_v60 = vrot.slane %v2768_v46, 3 }
 0x2fa   : > { %1038 = vrot.lane.b32.xlu0 %v804_v20, %s2360_s25  ;;  %v1231_v20 = vsel %vm1210_vm15, %v491_v47, %v867_v29  ;;  %v516_v47 = vrot.slane %v2554_v30, 1  ;;  %v1229_v29 = vsel %vm1210_vm15, %v489_v40, %v863_v0 }
 0x2fb   : > { %916 = vrot.lane.b32.xlu1 %v743_v14, %s2360_s25  ;;  %v807_v14 = vperm.slane %v3510_v28, 0 }
 0x2fc   : > { %v847_v33 = vpop.permute.xlu0 %846 }
 0x2fd   : > { %v1221_v50 = vsel %vm1210_vm15, %v482_v38, %v847_v33  ;;  %v861_v9 = vpop.permute.xlu1 %860  ;;  %918 = vrot.lane.b32.xlu2 %v744_v31, %s2360_s25  ;;  %v745_v31 = vperm.slane %v515_v23, 0  ;;  %v746_v33 = vperm.slane %v2554_v30, 0 }
 0x2fe   : > { %v2815_v48 = vld.sshfl [vmem:[#allocation1 + $0x20] sm:$0xff pattern:$0x73625140]  ;;  %1486 = vst [vmem:[#allocation1 + $0x2] ss:$4 sm:$0xff] %v1221_v50  ;;  %v1228_v40 = vsel %vm1210_vm15, %v488_v37, %v861_v9  ;;  %v518_v37 = vrot.slane %v2554_v30, 3 }
 0x2ff   : > { %1498 = vst [vmem:[#allocation1 + $0x20] ss:$4 sm:$0xff] %v1231_v20  ;;  %v875_v38 = vpop.permute.xlu2 %874 }
 0x300   : > { %1500 = vst [vmem:[#allocation1 + $0x22] ss:$4 sm:$0xff] %v1233_v6  ;;  %v747_v6 = vperm.slane %v516_v47, 0 }
 0x302   : > { %1044 = vrot.lane.b32.xlu0 %v807_v14, %s2360_s25  ;;  %v810_v14 = vperm.slane %v2768_v46, 0 }
 0x303   : > { %920 = vrot.lane.b32.xlu1 %v745_v31, %s2360_s25  ;;  %v517_v31 = vrot.slane %v2554_v30, 2 }
 0x305   : > { %v2831_v50 = vld.sshfl [vmem:[#allocation1] sm:$0xff pattern:$0x73625140]  ;;  %v865_v53 = vpop.permute.xlu1 %864  ;;  %922 = vrot.lane.b32.xlu2 %v746_v33, %s2360_s25 }
 0x306   : > { %1496 = vst [vmem:[#allocation1 + $0x2] ss:$4 sm:$0xff] %v1229_v29  ;;  %v1230_v20 = vsel %vm1210_vm15, %v490_v45, %v865_v53  ;;  %v748_v45 = vperm.slane %v517_v31, 0  ;;  %v813_v29 = vperm.slane %v3509_v60, 0  ;;  %v565_v60 = vrot.slane %v2745_v57, 1 }
 0x307   : > { %1494 = vst [vmem:[#allocation1] ss:$4 sm:$0xff] %v1227_v22  ;;  %v879_v0 = vpop.permute.xlu2 %878  ;;  %v519_v22 = vrot.slane %v2554_v30, 4 }
 0x308   : > { %1495 = vst [vmem:[#allocation1 + $0x1] ss:$4 sm:$0xff] %v1228_v40  ;;  %v1237_v40 = vsel %vm1210_vm15, %v496_v8, %v879_v0 }
 0x309   : > { %1497 = vst [vmem:[#allocation1 + $0x3] ss:$4 sm:$0xff] %v1230_v20  ;;  %v1235_v20 = vsel %vm1210_vm15, %v2526_v16, %v875_v38  ;;  %v750_v38 = vperm.slane %v519_v22, 0 }
 0x30a   : > { %1050 = vrot.lane.b32.xlu0 %v810_v14, %s2360_s25 }
 0x30b   : > { %924 = vrot.lane.b32.xlu1 %v747_v6, %s2360_s25  ;;  %v3507_v6 = vrot.slane %v2768_v46, 6 }
 0x30d   : > { %v869_v33 = vpop.permute.xlu1 %868  ;;  %926 = vrot.lane.b32.xlu2 %v748_v45, %s2360_s25  ;;  %v816_v0 = vperm.slane %v3507_v6, 0  ;;  %v526_v6 = vrot.slane %v2563_v34, 4 }
 0x30e   : > { %v1232_v9 = vsel %vm1210_vm15, %v492_v51, %v869_v33  ;;  %v749_v51 = vperm.slane %v518_v37, 0  ;;  %v520_v33 = vrot.slane %v2554_v30, 5 }
 0x30f   : > { %1499 = vst [vmem:[#allocation1 + $0x21] ss:$4 sm:$0xff] %v1232_v9  ;;  %v883_v53 = vpop.permute.xlu2 %882 }
 0x310   : > { %v2862_v14 = vld.sshfl [vmem:[#allocation1] sm:$0xff pattern:$0x73625140] }
 0x311   : > { %1504 = vst [vmem:[#allocation1] ss:$4 sm:$0xff] %v1235_v20  ;;  %v751_v20 = vperm.slane %v520_v33, 0 }
 0x312   : > { %1506 = vst [vmem:[#allocation1 + $0x2] ss:$4 sm:$0xff] %v1237_v40  ;;  %1056 = vrot.lane.b32.xlu0 %v813_v29, %s2360_s25  ;;  %v521_v29 = vrot.slane %v2554_v30, 6  ;;  %v3506_v40 = vrot.slane %v2786_v1, 1 }
 0x313   : > { %928 = vrot.lane.b32.xlu1 %v749_v51, %s2360_s25  ;;  %v522_v51 = vrot.slane %v2554_v30, 7 }
 0x314   : > { %v752_v11 = vperm.slane %v521_v29, 0 }
 0x315   : > { %v873_v45 = vpop.permute.xlu1 %872  ;;  %930 = vrot.lane.b32.xlu2 %v750_v38, %s2360_s25  ;;  %v1239_v38 = vsel %vm1210_vm15, %v498_v2, %v883_v53  ;;  %v753_v2 = vperm.slane %v522_v51, 0  ;;  %v754_v53 = vperm.slane %v2563_v34, 0 }
 0x316   : > { %v1234_v8 = vsel %vm1210_vm15, %v494_v58, %v873_v45 }
 0x317   : > { %1501 = vst [vmem:[#allocation1 + $0x23] ss:$4 sm:$0xff] %v1234_v8  ;;  %v887_v9 = vpop.permute.xlu2 %886 }
 0x31a   : > { %1062 = vrot.lane.b32.xlu0 %v816_v0, %s2360_s25  ;;  %v819_v0 = vperm.slane %v3506_v40, 0 }
 0x31b   : > { %932 = vrot.lane.b32.xlu1 %v751_v20, %s2360_s25  ;;  %v1241_v20 = vsel %vm1210_vm15, %v500_v41, %v887_v9 }
 0x31d   : > { %v877_v58 = vpop.permute.xlu1 %876  ;;  %934 = vrot.lane.b32.xlu2 %v752_v11, %s2360_s25 }
 0x31e   : > { %v2894_v45 = vld.sshfl [vmem:[#allocation1 + $0x20] sm:$0xff pattern:$0x73625140]  ;;  %v1236_v8 = vsel %vm1210_vm15, %v495_v63, %v877_v58  ;;  %v3505_v63 = vrot.slane %v2786_v1, 4  ;;  %v523_v58 = vrot.slane %v2563_v34, 1 }
 0x31f   : > { %1508 = vst [vmem:[#allocation1 + $0x20] ss:$4 sm:$0xff] %v1239_v38  ;;  %v891_v11 = vpop.permute.xlu2 %890 }
 0x320   : > { %1510 = vst [vmem:[#allocation1 + $0x22] ss:$4 sm:$0xff] %v1241_v20  ;;  %v822_v9 = vperm.slane %v3505_v63, 0  ;;  %v524_v20 = vrot.slane %v2563_v34, 2 }
 0x321   : > { %1505 = vst [vmem:[#allocation1 + $0x1] ss:$4 sm:$0xff] %v1236_v8 }
 0x322   : > { %1068 = vrot.lane.b32.xlu0 %v819_v0, %s2360_s25  ;;  %v755_v0 = vperm.slane %v523_v58, 0 }
 0x323   : > { %936 = vrot.lane.b32.xlu1 %v753_v2, %s2360_s25  ;;  %v3508_v2 = vrot.slane %v2786_v1, 7 }
 0x325   : > { %v881_v38 = vpop.permute.xlu1 %880  ;;  %938 = vrot.lane.b32.xlu2 %v754_v53, %s2360_s25  ;;  %v756_v53 = vperm.slane %v524_v20, 0 }
 0x326   : > { %v1238_v41 = vsel %vm1210_vm15, %v497_v18, %v881_v38  ;;  %v525_v38 = vrot.slane %v2563_v34, 3 }
 0x327   : > { %1507 = vst [vmem:[#allocation1 + $0x3] ss:$4 sm:$0xff] %v1238_v41  ;;  %v895_v8 = vpop.permute.xlu2 %894  ;;  %v1243_v41 = vsel %vm1210_vm15, %v2536_v21, %v891_v11 }
 0x328   : > { %v1245_v40 = vsel %vm1210_vm15, %v503_v27, %v895_v8  ;;  %v757_v11 = vperm.slane %v525_v38, 0  ;;  %v527_v27 = vrot.slane %v2563_v34, 5 }
 0x32a   : > { %1074 = vrot.lane.b32.xlu0 %v822_v9, %s2360_s25 }
 0x32b   : > { %940 = vrot.lane.b32.xlu1 %v755_v0, %s2360_s25  ;;  %v825_v0 = vperm.slane %v3508_v2, 0  ;;  %v762_v2 = vperm.slane %v2577_v42, 0 }
 0x32d   : > { %v885_v18 = vpop.permute.xlu1 %884  ;;  %942 = vrot.lane.b32.xlu2 %v756_v53, %s2360_s25 }
 0x32e   : > { %v2929_v63 = vld.sshfl [vmem:[#allocation1] sm:$0xff pattern:$0x73625140]  ;;  %v1240_v9 = vsel %vm1210_vm15, %v499_v36, %v885_v18  ;;  %v758_v36 = vperm.slane %v526_v6, 0 }
 0x32f   : > { %1514 = vst [vmem:[#allocation1] ss:$4 sm:$0xff] %v1243_v41  ;;  %v899_v53 = vpop.permute.xlu2 %898  ;;  %v528_v41 = vrot.slane %v2563_v34, 6 }
 0x330   : > { %1516 = vst [vmem:[#allocation1 + $0x2] ss:$4 sm:$0xff] %v1245_v40  ;;  %v1247_v16 = vsel %vm1210_vm15, %v505_v10, %v899_v53  ;;  %v530_v10 = vrot.slane %v2577_v42, 1 }
 0x331   : > { %1509 = vst [vmem:[#allocation1 + $0x21] ss:$4 sm:$0xff] %v1240_v9  ;;  %v759_v9 = vperm.slane %v527_v27, 0 }
 0x332   : > { %1080 = vrot.lane.b32.xlu0 %v825_v0, %s2360_s25  ;;  %v760_v0 = vperm.slane %v528_v41, 0 }
 0x333   : > { %944 = vrot.lane.b32.xlu1 %v757_v11, %s2360_s25 }
 0x335   : > { %v889_v18 = vpop.permute.xlu1 %888  ;;  %946 = vrot.lane.b32.xlu2 %v758_v36, %s2360_s25  ;;  %v529_v36 = vrot.slane %v2563_v34, 7 }
 0x336   : > { %v1242_v40 = vsel %vm1210_vm15, %v501_v55, %v889_v18 }
 0x337   : > { %1511 = vst [vmem:[#allocation1 + $0x23] ss:$4 sm:$0xff] %v1242_v40  ;;  %v903_v8 = vpop.permute.xlu2 %902 }
 0x338   : > { %v1249_v40 = vsel %vm1210_vm15, %v507_v17, %v903_v8  ;;  %v763_v8 = vperm.slane %v530_v10, 0 }
 0x33b   : > { %948 = vrot.lane.b32.xlu1 %v759_v9, %s2360_s25 }
 0x33d   : > { %v893_v11 = vpop.permute.xlu1 %892  ;;  %950 = vrot.lane.b32.xlu2 %v760_v0, %s2360_s25  ;;  %v761_v0 = vperm.slane %v529_v36, 0 }
 0x33e   : > { %v2962_v55 = vld.sshfl [vmem:[#allocation1 + $0x20] sm:$0xff pattern:$0x73625140]  ;;  %v1244_v18 = vsel %vm1210_vm15, %v502_v7, %v893_v11  ;;  %v531_v11 = vrot.slane %v2577_v42, 2 }
 0x33f   : > { %1518 = vst [vmem:[#allocation1 + $0x20] ss:$4 sm:$0xff] %v1247_v16  ;;  %v907_v9 = vpop.permute.xlu2 %906 }
 0x340   : > { %1520 = vst [vmem:[#allocation1 + $0x22] ss:$4 sm:$0xff] %v1249_v40  ;;  %v764_v16 = vperm.slane %v531_v11, 0 }
 0x341   : > { %1515 = vst [vmem:[#allocation1 + $0x1] ss:$4 sm:$0xff] %v1244_v18 }
 0x343   : > { %952 = vrot.lane.b32.xlu1 %v761_v0, %s2360_s25 }
 0x345   : > { %v897_v53 = vpop.permute.xlu1 %896  ;;  %954 = vrot.lane.b32.xlu2 %v762_v2, %s2360_s25  ;;  %v533_v2 = vrot.slane %v2577_v42, 4 }
 0x346   : > { %v1246_v7 = vsel %vm1210_vm15, %v504_v4, %v897_v53  ;;  %v1251_v4 = vsel %vm1210_vm15, %v2544_v25, %v907_v9 }
 0x347   : > { %1517 = vst [vmem:[#allocation1 + $0x3] ss:$4 sm:$0xff] %v1246_v7  ;;  %v911_v17 = vpop.permute.xlu2 %910 }
 0x348   : > { %v1253_v53 = vsel %vm1210_vm15, %v510_v5, %v911_v17 }
 0x34b   : > { %956 = vrot.lane.b32.xlu1 %v763_v8, %s2360_s25  ;;  %v534_v8 = vrot.slane %v2577_v42, 5 }
 0x34d   : > { %v901_v18 = vpop.permute.xlu1 %900  ;;  %958 = vrot.lane.b32.xlu2 %v764_v16, %s2360_s25  ;;  %v766_v16 = vperm.slane %v533_v2, 0  ;;  %v767_v9 = vperm.slane %v534_v8, 0 }
 0x34e   : > { %v1522_v40 = vld.sshfl [vmem:[#allocation1] sm:$0xff pattern:$0x73625140]  ;;  %v1248_v0 = vsel %vm1210_vm15, %v506_v61, %v901_v18  ;;  %v536_v18 = vrot.slane %v2577_v42, 7 }
 0x34f   : > { %1524 = vst [vmem:[#allocation1] ss:$4 sm:$0xff] %v1251_v4  ;;  %v915_v7 = vpop.permute.xlu2 %914 }
 0x350   : > { %1526 = vst [vmem:[#allocation1 + $0x2] ss:$4 sm:$0xff] %v1253_v53  ;;  %v769_v4 = vperm.slane %v536_v18, 0  ;;  %v1255_v21 = vsel %vm1210_vm15, %v512_v15, %v915_v7  ;;  %v541_v7 = vrot.slane %v2601_v54, 5 }
 0x351   : > { %1519 = vst [vmem:[#allocation1 + $0x21] ss:$4 sm:$0xff] %v1248_v0  ;;  %v770_v0 = vperm.slane %v2601_v54, 0 }
 0x353   : > { %962 = vrot.lane.b32.xlu1 %v766_v16, %s2360_s25 }
 0x354   : > { %1730 = vxpose.xlu0.b32.start [1/4] (short) (narrow) %v1522_v40, 8  ;;  %v538_v40 = vrot.slane %v2601_v54, 2 }
 0x355   : > { %v905_v61 = vpop.permute.xlu1 %904  ;;  %964 = vrot.lane.b32.xlu2 %v767_v9, %s2360_s25 }
 0x356   : > { %v1250_v5 = vsel %vm1210_vm15, %v508_v35, %v905_v61 }
 0x357   : > { %1521 = vst [vmem:[#allocation1 + $0x23] ss:$4 sm:$0xff] %v1250_v5  ;;  %v919_v17 = vpop.permute.xlu2 %918  ;;  %v772_v5 = vperm.slane %v538_v40, 0 }
 0x358   : > { %v1257_v9 = vsel %vm1210_vm15, %v514_v59, %v919_v17 }
 0x35b   : > { %968 = vrot.lane.b32.xlu1 %v769_v4, %s2360_s25  ;;  %v539_v4 = vrot.slane %v2601_v54, 3 }
 0x35d   : > { %v909_v53 = vpop.permute.xlu1 %908  ;;  %970 = vrot.lane.b32.xlu2 %v770_v0, %s2360_s25  ;;  %v773_v15 = vperm.slane %v539_v4, 0  ;;  %v542_v0 = vrot.slane %v2601_v54, 6 }
 0x35e   : > { %v1523_v16 = vld.sshfl [vmem:[#allocation1 + $0x20] sm:$0xff pattern:$0x73625140]  ;;  %v1252_v35 = vsel %vm1210_vm15, %v509_v12, %v909_v53  ;;  %v775_v53 = vperm.slane %v541_v7, 0 }
 0x35f   : > { %1528 = vst [vmem:[#allocation1 + $0x20] ss:$4 sm:$0xff] %v1255_v21  ;;  %v923_v61 = vpop.permute.xlu2 %922  ;;  %1731 = vxpose.xlu0.b32.cont [2/4] (short) (narrow) %v1523_v16, 8  ;;  %v776_v21 = vperm.slane %v542_v0, 0 }
 0x360   : > { %1530 = vst [vmem:[#allocation1 + $0x22] ss:$4 sm:$0xff] %v1257_v9 }
 0x361   : > { %1525 = vst [vmem:[#allocation1 + $0x1] ss:$4 sm:$0xff] %v1252_v35  ;;  %v544_v35 = vrot.slane %v2640_v26, 1 }
 0x363   : > { %974 = vrot.lane.b32.xlu1 %v772_v5, %s2360_s25 }
 0x365   : > { %v913_v12 = vpop.permute.xlu1 %912  ;;  %976 = vrot.lane.b32.xlu2 %v773_v15, %s2360_s25 }
 0x366   : > { %v1254_v59 = vsel %vm1210_vm15, %v511_v24, %v913_v12  ;;  %v1259_v24 = vsel %vm1210_vm15, %v2554_v30, %v923_v61 }
 0x367   : > { %1527 = vst [vmem:[#allocation1 + $0x3] ss:$4 sm:$0xff] %v1254_v59  ;;  %v927_v17 = vpop.permute.xlu2 %926  ;;  %v778_v59 = vperm.slane %v2640_v26, 0 }
 0x368   : > { %v1261_v15 = vsel %vm1210_vm15, %v517_v31, %v927_v17 }
 0x36b   : > { %980 = vrot.lane.b32.xlu1 %v775_v53, %s2360_s25  ;;  %v779_v53 = vperm.slane %v544_v35, 0 }
 0x36d   : > { %v917_v16 = vpop.permute.xlu1 %916  ;;  %982 = vrot.lane.b32.xlu2 %v776_v21, %s2360_s25  ;;  %v547_v21 = vrot.slane %v2640_v26, 4 }
 0x36e   : > { %v1532_v9 = vld.sshfl [vmem:[#allocation1] sm:$0xff pattern:$0x73625140]  ;;  %v1256_v5 = vsel %vm1210_vm15, %v513_v52, %v917_v16  ;;  %v546_v52 = vrot.slane %v2640_v26, 3 }
 0x36f   : > { %1534 = vst [vmem:[#allocation1] ss:$4 sm:$0xff] %v1259_v24  ;;  %v931_v12 = vpop.permute.xlu2 %930  ;;  %1732 = vxpose.xlu0.b32.cont [3/4] (short) (narrow) %v1532_v9, 8  ;;  %v782_v24 = vperm.slane %v547_v21, 0 }
 0x370   : > { %1536 = vst [vmem:[#allocation1 + $0x2] ss:$4 sm:$0xff] %v1261_v15  ;;  %v781_v16 = vperm.slane %v546_v52, 0  ;;  %v1263_v25 = vsel %vm1210_vm15, %v519_v22, %v931_v12 }
 0x371   : > { %1529 = vst [vmem:[#allocation1 + $0x21] ss:$4 sm:$0xff] %v1256_v5  ;;  %v549_v5 = vrot.slane %v2640_v26, 6 }
 0x373   : > { %986 = vrot.lane.b32.xlu1 %v778_v59, %s2360_s25 }
 0x375   : > { %v921_v61 = vpop.permute.xlu1 %920  ;;  %988 = vrot.lane.b32.xlu2 %v779_v53, %s2360_s25 }
 0x376   : > { %v1258_v31 = vsel %vm1210_vm15, %v515_v23, %v921_v61  ;;  %v550_v61 = vrot.slane %v2640_v26, 7 }
 0x377   : > { %1531 = vst [vmem:[#allocation1 + $0x23] ss:$4 sm:$0xff] %v1258_v31  ;;  %v935_v17 = vpop.permute.xlu2 %934  ;;  %v784_v31 = vperm.slane %v549_v5, 0 }
 0x378   : > { %v1265_v59 = vsel %vm1210_vm15, %v521_v29, %v935_v17  ;;  %v785_v22 = vperm.slane %v550_v61, 0 }
 0x37b   : > { %992 = vrot.lane.b32.xlu1 %v781_v16, %s2360_s25 }
 0x37d   : > { %v925_v9 = vpop.permute.xlu1 %924  ;;  %994 = vrot.lane.b32.xlu2 %v782_v24, %s2360_s25  ;;  %v552_v24 = vrot.slane %v2681_v3, 2 }
 0x37e   : > { %v1533_v23 = vld.sshfl [vmem:[#allocation1 + $0x20] sm:$0xff pattern:$0x73625140]  ;;  %v1260_v15 = vsel %vm1210_vm15, %v516_v47, %v925_v9  ;;  %v551_v47 = vrot.slane %v2681_v3, 1 }
 0x37f   : > { %1538 = vst [vmem:[#allocation1 + $0x20] ss:$4 sm:$0xff] %v1263_v25  ;;  %v939_v53 = vpop.permute.xlu2 %938  ;;  %1733 = vxpose.xlu0.b32.end [4/4] (short) (narrow) %v1533_v23, 8  ;;  %v788_v9 = vperm.slane %v552_v24, 0  ;;  %v554_v23 = vrot.slane %v2681_v3, 4 }
 0x380   : > { %1540 = vst [vmem:[#allocation1 + $0x22] ss:$4 sm:$0xff] %v1265_v59  ;;  %v787_v16 = vperm.slane %v551_v47, 0 }
 0x381   : > { %1535 = vst [vmem:[#allocation1 + $0x1] ss:$4 sm:$0xff] %v1260_v15  ;;  %v961_v15 = vpop.permute.xlu0 %960 }
 0x383   : > { %998 = vrot.lane.b32.xlu1 %v784_v31, %s2360_s25 }
 0x385   : > { %v929_v12 = vpop.permute.xlu1 %928  ;;  %1000 = vrot.lane.b32.xlu2 %v785_v22, %s2360_s25 }
 0x386   : > { %v1262_v29 = vsel %vm1210_vm15, %v518_v37, %v929_v12  ;;  %v1267_v37 = vsel %vm1210_vm15, %v2563_v34, %v939_v53 }
 0x387   : > { %1537 = vst [vmem:[#allocation1 + $0x3] ss:$4 sm:$0xff] %v1262_v29  ;;  %v943_v17 = vpop.permute.xlu2 %942  ;;  %v555_v29 = vrot.slane %v2681_v3, 5 }
 0x388   : > { %v1269_v22 = vsel %vm1210_vm15, %v524_v20, %v943_v17 }
 0x389   : > { %v791_v53 = vperm.slane %v555_v29, 0 }
 0x38b   : > { %1004 = vrot.lane.b32.xlu1 %v787_v16, %s2360_s25  ;;  %v790_v16 = vperm.slane %v554_v23, 0 }
 0x38d   : > { %v933_v25 = vpop.permute.xlu1 %932  ;;  %1006 = vrot.lane.b32.xlu2 %v788_v9, %s2360_s25 }
 0x38e   : > { %v3095_v59 = vld.sshfl [vmem:[#allocation1] sm:$0xff pattern:$0x73625140]  ;;  %v1264_v31 = vsel %vm1210_vm15, %v520_v33, %v933_v25  ;;  %v557_v33 = vrot.slane %v2681_v3, 7  ;;  %v3114_v25 = vpop.permute.xlu0 %966 }
 0x38f   : > { %1544 = vst [vmem:[#allocation1] ss:$4 sm:$0xff] %v1267_v37  ;;  %v947_v12 = vpop.permute.xlu2 %946 }
 0x390   : > { %1546 = vst [vmem:[#allocation1 + $0x2] ss:$4 sm:$0xff] %v1269_v22  ;;  %v793_v37 = vperm.slane %v557_v33, 0  ;;  %v559_v22 = vrot.slane %v2717_v19, 2  ;;  %v1271_v30 = vsel %vm1210_vm15, %v526_v6, %v947_v12 }
 0x391   : > { %1539 = vst [vmem:[#allocation1 + $0x21] ss:$4 sm:$0xff] %v1264_v31  ;;  %v794_v31 = vperm.slane %v2717_v19, 0 }
 0x393   : > { %1010 = vrot.lane.b32.xlu1 %v790_v16, %s2360_s25 }
 0x395   : > { %v937_v9 = vpop.permute.xlu1 %936  ;;  %1012 = vrot.lane.b32.xlu2 %v791_v53, %s2360_s25 }
 0x396   : > { %v1266_v20 = vsel %vm1210_vm15, %v522_v51, %v937_v9  ;;  %v3136_v6 = vpop.permute.xlu0 %972 }
 0x397   : > { %1541 = vst [vmem:[#allocation1 + $0x23] ss:$4 sm:$0xff] %v1266_v20  ;;  %v951_v17 = vpop.permute.xlu2 %950 }
 0x398   : > { %v1273_v9 = vsel %vm1210_vm15, %v528_v41, %v951_v17  ;;  %v3511_v41 = vrot.slane %v2717_v19, 5 }
 0x39b   : > { %1016 = vrot.lane.b32.xlu1 %v793_v37, %s2360_s25  ;;  %v796_v37 = vperm.slane %v559_v22, 0 }
 0x39d   : > { %v941_v16 = vpop.permute.xlu1 %940  ;;  %1018 = vrot.lane.b32.xlu2 %v794_v31, %s2360_s25  ;;  %v560_v31 = vrot.slane %v2717_v19, 3 }
 0x39e   : > { %v3125_v51 = vld.sshfl [vmem:[#allocation1 + $0x20] sm:$0xff pattern:$0x73625140]  ;;  %v1268_v53 = vsel %vm1210_vm15, %v523_v58, %v941_v16 }
 0x39f   : > { %1548 = vst [vmem:[#allocation1 + $0x20] ss:$4 sm:$0xff] %v1271_v30  ;;  %v955_v20 = vpop.permute.xlu2 %954  ;;  %v797_v58 = vperm.slane %v560_v31, 0  ;;  %v563_v30 = vrot.slane %v2717_v19, 6 }
 0x3a0   : > { %1550 = vst [vmem:[#allocation1 + $0x22] ss:$4 sm:$0xff] %v1273_v9 }
 0x3a1   : > { %1545 = vst [vmem:[#allocation1 + $0x1] ss:$4 sm:$0xff] %v1268_v53  ;;  %v799_v53 = vperm.slane %v3511_v41, 0  ;;  %v800_v9 = vperm.slane %v563_v30, 0  ;;  %v802_v41 = vperm.slane %v2745_v57, 0 }
 0x3a3   : > { %1022 = vrot.lane.b32.xlu1 %v796_v37, %s2360_s25  ;;  %v3152_v37 = vpop.permute.xlu0 %978 }
 0x3a5   : > { %v945_v12 = vpop.permute.xlu1 %944  ;;  %1024 = vrot.lane.b32.xlu2 %v797_v58, %s2360_s25 }
 0x3a6   : > { %v1270_v17 = vsel %vm1210_vm15, %v525_v38, %v945_v12  ;;  %v1278_v38 = vsel %vm1210_vm15, %v532_v43, %v961_v15  ;;  %v803_v43 = vperm.slane %v565_v60, 0 }
 0x3a7   : > { %1547 = vst [vmem:[#allocation1 + $0x3] ss:$4 sm:$0xff] %v1270_v17  ;;  %v959_v16 = vpop.permute.xlu2 %958  ;;  %v1275_v17 = vsel %vm1210_vm15, %v2577_v42, %v955_v20  ;;  %v578_v42 = vrot.slane %v2768_v46, 7 }
 0x3ab   : > { %1028 = vrot.lane.b32.xlu1 %v799_v53, %s2360_s25  ;;  %v985_v20 = vpop.permute.xlu0 %984 }
 0x3ad   : > { %v949_v58 = vpop.permute.xlu1 %948  ;;  %1030 = vrot.lane.b32.xlu2 %v800_v9, %s2360_s25  ;;  %v1277_v9 = vsel %vm1210_vm15, %v531_v11, %v959_v16  ;;  %v568_v11 = vrot.slane %v2745_v57, 4 }
 0x3ae   : > { %v3159_v12 = vld.sshfl [vmem:[#allocation1] sm:$0xff pattern:$0x73625140]  ;;  %v1272_v53 = vsel %vm1210_vm15, %v527_v27, %v949_v58  ;;  %v567_v27 = vrot.slane %v2745_v57, 3 }
 0x3af   : > { %1557 = vst [vmem:[#allocation1 + $0x3] ss:$4 sm:$0xff] %v1278_v38  ;;  %v965_v28 = vpop.permute.xlu2 %964 }
 0x3b0   : > { %1554 = vst [vmem:[#allocation1] ss:$4 sm:$0xff] %v1275_v17  ;;  %v805_v16 = vperm.slane %v567_v27, 0  ;;  %v1280_v34 = vsel %vm1210_vm15, %v534_v8, %v965_v28  ;;  %v572_v8 = vrot.slane %v2768_v46, 1 }
 0x3b1   : > { %1556 = vst [vmem:[#allocation1 + $0x2] ss:$4 sm:$0xff] %v1277_v9 }
 0x3b2   : > { %1549 = vst [vmem:[#allocation1 + $0x21] ss:$4 sm:$0xff] %v1272_v53  ;;  %v570_v53 = vrot.slane %v2745_v57, 6 }
 0x3b3   : > { %1034 = vrot.lane.b32.xlu1 %v802_v41, %s2360_s25  ;;  %v806_v41 = vperm.slane %v568_v11, 0 }
 0x3b4   : > { %v808_v28 = vperm.slane %v570_v53, 0 }
 0x3b5   : > { %v953_v15 = vpop.permute.xlu1 %952  ;;  %1036 = vrot.lane.b32.xlu2 %v803_v43, %s2360_s25  ;;  %v1281_v43 = vsel %vm1210_vm15, %v535_v49, %v3114_v25 }
 0x3b6   : > { %v1274_v58 = vsel %vm1210_vm15, %v529_v36, %v953_v15 }
 0x3b7   : > { %1551 = vst [vmem:[#allocation1 + $0x23] ss:$4 sm:$0xff] %v1274_v58  ;;  %v971_v38 = vpop.permute.xlu2 %970  ;;  %v571_v58 = vrot.slane %v2745_v57, 7 }
 0x3bb   : > { %1040 = vrot.lane.b32.xlu1 %v805_v16, %s2360_s25  ;;  %v3199_v16 = vpop.permute.xlu0 %990 }
 0x3bd   : > { %v957_v17 = vpop.permute.xlu1 %956  ;;  %1042 = vrot.lane.b32.xlu2 %v806_v41, %s2360_s25 }
 0x3be   : > { %v3189_v36 = vld.sshfl [vmem:[#allocation1 + $0x20] sm:$0xff pattern:$0x73625140]  ;;  %v1276_v9 = vsel %vm1210_vm15, %v530_v10, %v957_v17  ;;  %v809_v10 = vperm.slane %v571_v58, 0  ;;  %v811_v17 = vperm.slane %v572_v8, 0 }
 0x3bf   : > { %1559 = vst [vmem:[#allocation1 + $0x21] ss:$4 sm:$0xff] %v1280_v34  ;;  %v977_v15 = vpop.permute.xlu2 %976  ;;  %v573_v34 = vrot.slane %v2768_v46, 2 }
 0x3c0   : > { %1560 = vst [vmem:[#allocation1 + $0x22] ss:$4 sm:$0xff] %v1281_v43 }
 0x3c1   : > { %1555 = vst [vmem:[#allocation1 + $0x1] ss:$4 sm:$0xff] %v1276_v9  ;;  %v1284_v9 = vsel %vm1210_vm15, %v537_v56, %v3136_v6  ;;  %v575_v56 = vrot.slane %v2768_v46, 4 }
 0x3c3   : > { %1046 = vrot.lane.b32.xlu1 %v808_v28, %s2360_s25  ;;  %v1283_v28 = vsel %vm1210_vm15, %v2601_v54, %v971_v38 }
 0x3c5   : > { %v963_v41 = vpop.permute.xlu1 %962  ;;  %1048 = vrot.lane.b32.xlu2 %v809_v10, %s2360_s25  ;;  %v997_v10 = vpop.permute.xlu0 %996 }
 0x3c6   : > { %v1279_v49 = vsel %vm1210_vm15, %v533_v2, %v963_v41  ;;  %v1286_v2 = vsel %vm1210_vm15, %v539_v4, %v977_v15  ;;  %v812_v41 = vperm.slane %v573_v34, 0  ;;  %v814_v4 = vperm.slane %v575_v56, 0 }
 0x3c7   : > { %1558 = vst [vmem:[#allocation1 + $0x20] ss:$4 sm:$0xff] %v1279_v49  ;;  %v983_v25 = vpop.permute.xlu2 %982 }
 0x3c8   : > { %v1562_v43 = vld.sshfl [vmem:[#allocation1] sm:$0xff pattern:$0x73625140] }
 0x3c9   : > { %1565 = vst [vmem:[#allocation1 + $0x1] ss:$4 sm:$0xff] %v1284_v9  ;;  %1794 = vxpose.xlu0.b32.start [1/4] (short) (narrow) %v1562_v43, 8  ;;  %v576_v9 = vrot.slane %v2768_v46, 5 }
 0x3ca   : > { %1564 = vst [vmem:[#allocation1] ss:$4 sm:$0xff] %v1283_v28 }
 0x3cb   : > { %1567 = vst [vmem:[#allocation1 + $0x3] ss:$4 sm:$0xff] %v1286_v2  ;;  %1052 = vrot.lane.b32.xlu1 %v811_v17, %s2360_s25  ;;  %v815_v15 = vperm.slane %v576_v9, 0  ;;  %v1287_v2 = vsel %vm1210_vm15, %v540_v62, %v3152_v37  ;;  %v580_v62 = vrot.slane %v2786_v1, 2 }
 0x3cd   : > { %v969_v49 = vpop.permute.xlu1 %968  ;;  %1054 = vrot.lane.b32.xlu2 %v812_v41, %s2360_s25  ;;  %v3237_v17 = vpop.permute.xlu0 %1002 }
 0x3ce   : > { %v1282_v6 = vsel %vm1210_vm15, %v536_v18, %v969_v49  ;;  %v1290_v18 = vsel %vm1210_vm15, %v543_v13, %v985_v20  ;;  %v817_v13 = vperm.slane %v578_v42, 0  ;;  %v818_v20 = vperm.slane %v2786_v1, 0 }
 0x3cf   : > { %1561 = vst [vmem:[#allocation1 + $0x23] ss:$4 sm:$0xff] %v1282_v6  ;;  %v989_v38 = vpop.permute.xlu2 %988  ;;  %v1289_v6 = vsel %vm1210_vm15, %v542_v0, %v983_v25 }
 0x3d3   : > { %1058 = vrot.lane.b32.xlu1 %v814_v4, %s2360_s25  ;;  %v820_v4 = vperm.slane %v580_v62, 0 }
 0x3d5   : > { %v975_v43 = vpop.permute.xlu1 %974  ;;  %1060 = vrot.lane.b32.xlu2 %v815_v15, %s2360_s25  ;;  %v581_v15 = vrot.slane %v2786_v1, 3 }
 0x3d6   : > { %v1563_v28 = vld.sshfl [vmem:[#allocation1 + $0x20] sm:$0xff pattern:$0x73625140]  ;;  %v1285_v41 = vsel %vm1210_vm15, %v538_v40, %v975_v43  ;;  %v1009_v40 = vpop.permute.xlu0 %1008  ;;  %v1293_v43 = vsel %vm1210_vm15, %v545_v32, %v3199_v16  ;;  %v3517_v32 = vrot.slane %v2640_v26, 5 }
 0x3d7   : > { %1571 = vst [vmem:[#allocation1 + $0x23] ss:$4 sm:$0xff] %v1290_v18  ;;  %v995_v49 = vpop.permute.xlu2 %994  ;;  %1795 = vxpose.xlu0.b32.cont [2/4] (short) (narrow) %v1563_v28, 8  ;;  %v1292_v28 = vsel %vm1210_vm15, %v544_v35, %v989_v38  ;;  %v821_v54 = vperm.slane %v581_v15, 0 }
 0x3d8   : > { %1568 = vst [vmem:[#allocation1 + $0x20] ss:$4 sm:$0xff] %v1287_v2  ;;  %v583_v2 = vrot.slane %v2786_v1, 5  ;;  %v1296_v16 = vsel %vm1210_vm15, %v3517_v32, %v997_v10  ;;  %v1295_v35 = vsel %vm1210_vm15, %v547_v21, %v995_v49 }
 0x3d9   : > { %1570 = vst [vmem:[#allocation1 + $0x22] ss:$4 sm:$0xff] %v1289_v6 }
 0x3da   : > { %1566 = vst [vmem:[#allocation1 + $0x2] ss:$4 sm:$0xff] %v1285_v41  ;;  %v823_v10 = vperm.slane %v583_v2, 0 }
 0x3db   : > { %1064 = vrot.lane.b32.xlu1 %v817_v13, %s2360_s25  ;;  %v584_v13 = vrot.slane %v2786_v1, 6 }
 0x3dd   : > { %v981_v37 = vpop.permute.xlu1 %980  ;;  %1066 = vrot.lane.b32.xlu2 %v818_v20, %s2360_s25  ;;  %v824_v21 = vperm.slane %v584_v13, 0 }
 0x3de   : > { %v1288_v0 = vsel %vm1210_vm15, %v541_v7, %v981_v37  ;;  %v1015_v20 = vpop.permute.xlu0 %1014 }
 0x3df   : > { %1569 = vst [vmem:[#allocation1 + $0x21] ss:$4 sm:$0xff] %v1288_v0  ;;  %v1001_v25 = vpop.permute.xlu2 %1000 }
 0x3e0   : > { %v1298_v37 = vsel %vm1210_vm15, %v550_v61, %v1001_v25 }
 0x3e1   : > { %v1572_v18 = vld.sshfl [vmem:[#allocation1] sm:$0xff pattern:$0x73625140] }
 0x3e2   : > { %1576 = vst [vmem:[#allocation1 + $0x2] ss:$4 sm:$0xff] %v1293_v43  ;;  %1796 = vxpose.xlu0.b32.cont [3/4] (short) (narrow) %v1572_v18, 8  ;;  %v3518_v43 = vrot.slane %v2681_v3, 3 }
 0x3e3   : > { %1575 = vst [vmem:[#allocation1 + $0x1] ss:$4 sm:$0xff] %v1292_v28  ;;  %1070 = vrot.lane.b32.xlu1 %v820_v4, %s2360_s25 }
 0x3e4   : > { %v1302_v18 = vsel %vm1210_vm15, %v3518_v43, %v1009_v40 }
 0x3e5   : > { %v987_v7 = vpop.permute.xlu1 %986  ;;  %1072 = vrot.lane.b32.xlu2 %v821_v54, %s2360_s25  ;;  %v1299_v54 = vsel %vm1210_vm15, %v2681_v3, %v3237_v17 }
 0x3e6   : > { %v1573_v41 = vld.sshfl [vmem:[#allocation1 + $0x20] sm:$0xff pattern:$0x73625140]  ;;  %v1291_v38 = vsel %vm1210_vm15, %v2640_v26, %v987_v7  ;;  %v1021_v25 = vpop.permute.xlu0 %1020  ;;  %v3519_v26 = vrot.slane %v2681_v3, 6 }
 0x3e7   : > { %1579 = vst [vmem:[#allocation1 + $0x21] ss:$4 sm:$0xff] %v1296_v16  ;;  %v1007_v6 = vpop.permute.xlu2 %1006 }
 0x3e8   : > { %1578 = vst [vmem:[#allocation1 + $0x20] ss:$4 sm:$0xff] %v1295_v35  ;;  %v1301_v32 = vsel %vm1210_vm15, %v552_v24, %v1007_v6  ;;  %v3520_v6 = vrot.slane %v2717_v19, 1 }
 0x3e9   : > { %1581 = vst [vmem:[#allocation1 + $0x23] ss:$4 sm:$0xff] %v1298_v37 }
 0x3ea   : > { %1574 = vst [vmem:[#allocation1] ss:$4 sm:$0xff] %v1291_v38  ;;  %1797 = vxpose.xlu0.b32.end [4/4] (short) (narrow) %v1573_v41, 8  ;;  %v1308_v37 = vsel %vm1210_vm15, %v3520_v6, %v1021_v25 }
 0x3eb   : > { %1076 = vrot.lane.b32.xlu1 %v823_v10, %s2360_s25 }
 0x3ed   : > { %v993_v49 = vpop.permute.xlu1 %992  ;;  %1078 = vrot.lane.b32.xlu2 %v824_v21, %s2360_s25 }
 0x3ee   : > { %v1294_v0 = vsel %vm1210_vm15, %v546_v52, %v993_v49  ;;  %v1027_v40 = vpop.permute.xlu0 %1026 }
 0x3ef   : > { %1577 = vst [vmem:[#allocation1 + $0x3] ss:$4 sm:$0xff] %v1294_v0  ;;  %v1013_v61 = vpop.permute.xlu2 %1012 }
 0x3f0   : > { %v1304_v24 = vsel %vm1210_vm15, %v555_v29, %v1013_v61 }
 0x3f5   : > { %v999_v4 = vpop.permute.xlu1 %998 }
 0x3f6   : > { %v3302_v28 = vld.sshfl [vmem:[#allocation1] sm:$0xff pattern:$0x73625140]  ;;  %v1297_v7 = vsel %vm1210_vm15, %v549_v5, %v999_v4  ;;  %v1305_v5 = vsel %vm1210_vm15, %v3519_v26, %v1015_v20 }
 0x3f7   : > { %1587 = vst [vmem:[#allocation1 + $0x3] ss:$4 sm:$0xff] %v1302_v18  ;;  %v1019_v52 = vpop.permute.xlu2 %1018 }
 0x3f8   : > { %1584 = vst [vmem:[#allocation1] ss:$4 sm:$0xff] %v1299_v54  ;;  %v1307_v21 = vsel %vm1210_vm15, %v2717_v19, %v1019_v52 }
 0x3f9   : > { %1586 = vst [vmem:[#allocation1 + $0x2] ss:$4 sm:$0xff] %v1301_v32 }
 0x3fa   : > { %1580 = vst [vmem:[#allocation1 + $0x22] ss:$4 sm:$0xff] %v1297_v7 }
 0x3fd   : > { %v1005_v16 = vpop.permute.xlu1 %1004 }
 0x3fe   : > { %v1300_v41 = vsel %vm1210_vm15, %v551_v47, %v1005_v16  ;;  %v1033_v47 = vpop.permute.xlu0 %1032  ;;  %v3523_v16 = vrot.slane %v2717_v19, 5 }
 0x3ff   : > { %1585 = vst [vmem:[#allocation1 + $0x1] ss:$4 sm:$0xff] %v1300_v41  ;;  %v1025_v17 = vpop.permute.xlu2 %1024 }
 0x400   : > { %v1310_v29 = vsel %vm1210_vm15, %v560_v31, %v1025_v17  ;;  %v3522_v31 = vrot.slane %v2717_v19, 4 }
 0x401   : > { %v3319_v35 = vld.sshfl [vmem:[#allocation1 + $0x20] sm:$0xff pattern:$0x73625140] }
 0x402   : > { %1590 = vst [vmem:[#allocation1 + $0x22] ss:$4 sm:$0xff] %v1305_v5  ;;  %v1311_v7 = vsel %vm1210_vm15, %v3522_v31, %v1027_v40  ;;  %v3525_v5 = vrot.slane %v2745_v57, 5 }
 0x403   : > { %1589 = vst [vmem:[#allocation1 + $0x21] ss:$4 sm:$0xff] %v1304_v24 }
 0x405   : > { %v1011_v38 = vpop.permute.xlu1 %1010 }
 0x406   : > { %v3327_v10 = vld.sshfl [vmem:[#allocation1] sm:$0xff pattern:$0x73625140]  ;;  %v1303_v20 = vsel %vm1210_vm15, %v554_v23, %v1011_v38  ;;  %v1039_v4 = vpop.permute.xlu0 %1038  ;;  %v3521_v23 = vrot.slane %v2717_v19, 7 }
 0x407   : > { %1595 = vst [vmem:[#allocation1 + $0x1] ss:$4 sm:$0xff] %v1308_v37  ;;  %v1031_v49 = vpop.permute.xlu2 %1030 }
 0x408   : > { %1594 = vst [vmem:[#allocation1] ss:$4 sm:$0xff] %v1307_v21  ;;  %v1314_v18 = vsel %vm1210_vm15, %v3521_v23, %v1033_v47  ;;  %v3528_v23 = vrot.slane %v2786_v1, 1 }
 0x409   : > { %1597 = vst [vmem:[#allocation1 + $0x3] ss:$4 sm:$0xff] %v1310_v29 }
 0x40a   : > { %1588 = vst [vmem:[#allocation1 + $0x20] ss:$4 sm:$0xff] %v1303_v20 }
 0x40d   : > { %v1017_v0 = vpop.permute.xlu1 %1016 }
 0x40e   : > { %v1306_v61 = vsel %vm1210_vm15, %v557_v33, %v1017_v0  ;;  %v1045_v52 = vpop.permute.xlu0 %1044 }
 0x40f   : > { %1591 = vst [vmem:[#allocation1 + $0x23] ss:$4 sm:$0xff] %v1306_v61  ;;  %v1037_v25 = vpop.permute.xlu2 %1036  ;;  %v3527_v61 = vrot.slane %v2768_v46, 6 }
 0x410   : > { %v1316_v26 = vsel %vm1210_vm15, %v565_v60, %v1037_v25 }
 0x413   : > { %1698 = vxpose.xlu2.b32.start [1/4] (short) (narrow) %v2862_v14, 8  ;;  %v1313_v14 = vsel %vm1210_vm15, %v563_v30, %v1031_v49  ;;  %v3526_v49 = vrot.slane %v2768_v46, 3 }
 0x415   : > { %v1023_v43 = vpop.permute.xlu1 %1022 }
 0x416   : > { %v3344_v54 = vld.sshfl [vmem:[#allocation1 + $0x20] sm:$0xff pattern:$0x73625140]  ;;  %v1309_v3 = vsel %vm1210_vm15, %v559_v22, %v1023_v43  ;;  %v3524_v22 = vrot.slane %v2745_v57, 2  ;;  %v1051_v19 = vpop.permute.xlu0 %1050 }
 0x417   : > { %1601 = vst [vmem:[#allocation1 + $0x23] ss:$4 sm:$0xff] %v1314_v18  ;;  %v1043_v33 = vpop.permute.xlu2 %1042 }
 0x418   : > { %1598 = vst [vmem:[#allocation1 + $0x20] ss:$4 sm:$0xff] %v1311_v7  ;;  %v1317_v17 = vsel %vm1210_vm15, %v3524_v22, %v1039_v4  ;;  %v1319_v38 = vsel %vm1210_vm15, %v568_v11, %v1043_v33 }
 0x419   : > { %1600 = vst [vmem:[#allocation1 + $0x22] ss:$4 sm:$0xff] %v1313_v14 }
 0x41a   : > { %1596 = vst [vmem:[#allocation1 + $0x2] ss:$4 sm:$0xff] %v1309_v3 }
 0x41b   : > { %1699 = vxpose.xlu2.b32.cont [2/4] (short) (narrow) %v2894_v45, 8 }
 0x41d   : > { %v1029_v32 = vpop.permute.xlu1 %1028 }
 0x41e   : > { %v1312_v40 = vsel %vm1210_vm15, %v3523_v16, %v1029_v32  ;;  %v1057_v47 = vpop.permute.xlu0 %1056  ;;  %v3529_v32 = vrot.slane %v2786_v1, 4 }
 0x41f   : > { %1599 = vst [vmem:[#allocation1 + $0x21] ss:$4 sm:$0xff] %v1312_v40  ;;  %v1049_v41 = vpop.permute.xlu2 %1048 }
 0x420   : > { %1666 = vxpose.xlu1.b32.start [1/4] (short) (narrow) %v2699_v39, 8  ;;  %v1320_v39 = vsel %vm1210_vm15, %v3525_v5, %v1045_v52 }
 0x421   : > { %v3363_v30 = vld.sshfl [vmem:[#allocation1] sm:$0xff pattern:$0x73625140] }
 0x422   : > { %1606 = vst [vmem:[#allocation1 + $0x2] ss:$4 sm:$0xff] %v1317_v17 }
 0x423   : > { %1605 = vst [vmem:[#allocation1 + $0x1] ss:$4 sm:$0xff] %v1316_v26  ;;  %1700 = vxpose.xlu2.b32.cont [3/4] (short) (narrow) %v2929_v63, 8  ;;  %v1322_v63 = vsel %vm1210_vm15, %v571_v58, %v1049_v41 }
 0x425   : > { %v1035_v45 = vpop.permute.xlu1 %1034 }
 0x426   : > { %v3372_v24 = vld.sshfl [vmem:[#allocation1 + $0x20] sm:$0xff pattern:$0x73625140]  ;;  %v1315_v60 = vsel %vm1210_vm15, %v2745_v57, %v1035_v45  ;;  %v1063_v29 = vpop.permute.xlu0 %1062 }
 0x427   : > { %1609 = vst [vmem:[#allocation1 + $0x21] ss:$4 sm:$0xff] %v1320_v39  ;;  %v1055_v6 = vpop.permute.xlu2 %1054 }
 0x428   : > { %1608 = vst [vmem:[#allocation1 + $0x20] ss:$4 sm:$0xff] %v1319_v38  ;;  %1667 = vxpose.xlu1.b32.cont [2/4] (short) (narrow) %v2739_v44, 8  ;;  %v1323_v44 = vsel %vm1210_vm15, %v2768_v46, %v1051_v19 }
 0x429   : > { %1611 = vst [vmem:[#allocation1 + $0x23] ss:$4 sm:$0xff] %v1322_v63 }
 0x42a   : > { %1604 = vst [vmem:[#allocation1] ss:$4 sm:$0xff] %v1315_v60 }
 0x42b   : > { %1701 = vxpose.xlu2.b32.end [4/4] (short) (narrow) %v2962_v55, 8  ;;  %v1325_v55 = vsel %vm1210_vm15, %v573_v34, %v1055_v6 }
 0x42d   : > { %v1041_v37 = vpop.permute.xlu1 %1040 }
 0x42e   : > { %v1318_v11 = vsel %vm1210_vm15, %v567_v27, %v1041_v37  ;;  %v1069_v25 = vpop.permute.xlu0 %1068 }
 0x42f   : > { %1607 = vst [vmem:[#allocation1 + $0x3] ss:$4 sm:$0xff] %v1318_v11  ;;  %v1061_v21 = vpop.permute.xlu2 %1060  ;;  %v1332_v18 = vsel %vm1210_vm15, %v3528_v23, %v1069_v25  ;;  %v2363_v25 = vmov 1934713408  }
 0x430   : > { %1668 = vxpose.xlu1.b32.cont [3/4] (short) (narrow) %v2831_v50, 8  ;;  %v1326_v50 = vsel %vm1210_vm15, %v3526_v49, %v1057_v47 }
 0x433   : > { %1762 = vxpose.xlu2.b32.start [1/4] (short) (narrow) %v3095_v59, 8 }
 0x435   : > { %v1047_v58 = vpop.permute.xlu1 %1046 }
 0x436   : > { %v1612_v20 = vld.sshfl [vmem:[#allocation1] sm:$0xff pattern:$0x73625140]  ;;  %v1321_v27 = vsel %vm1210_vm15, %v570_v53, %v1047_v58  ;;  %v1328_v53 = vsel %vm1210_vm15, %v576_v9, %v1061_v21  ;;  %v2362_v21 = vmov 1983009808  }
 0x437   : > { %1614 = vst [vmem:[#allocation1] ss:$4 sm:$0xff] %v1323_v44  ;;  %v1067_v59 = vpop.permute.xlu2 %1066  ;;  %v1975_v58 = vunpack.c.l.s4 %v2362_v21 }
 0x438   : > { %1616 = vst [vmem:[#allocation1 + $0x2] ss:$4 sm:$0xff] %v1325_v55  ;;  %1669 = vxpose.xlu1.b32.end [4/4] (short) (narrow) %v2815_v48, 8  ;;  %v1329_v48 = vsel %vm1210_vm15, %v3527_v61, %v1063_v29  ;;  %v1331_v9 = vsel %vm1210_vm15, %v2786_v1, %v1067_v59 }
 0x439   : > { %1617 = vst [vmem:[#allocation1 + $0x3] ss:$4 sm:$0xff] %v1326_v50  ;;  %v1976_v50 = vunpack.c.0.s8 %v1975_v58 }
 0x43a   : > { %1610 = vst [vmem:[#allocation1 + $0x22] ss:$4 sm:$0xff] %v1321_v27 }
 0x43b   : > { %1763 = vxpose.xlu2.b32.cont [2/4] (short) (narrow) %v3125_v51, 8 }
 0x43d   : > { %v1053_v0 = vpop.permute.xlu1 %1052 }
 0x43e   : > { %v1324_v57 = vsel %vm1210_vm15, %v572_v8, %v1053_v0 }
 0x43f   : > { %1615 = vst [vmem:[#allocation1 + $0x1] ss:$4 sm:$0xff] %v1324_v57  ;;  %v1073_v4 = vpop.permute.xlu2 %1072 }
 0x441   : > { %v1613_v34 = vld.sshfl [vmem:[#allocation1 + $0x20] sm:$0xff pattern:$0x73625140] }
 0x442   : > { %1619 = vst [vmem:[#allocation1 + $0x21] ss:$4 sm:$0xff] %v1328_v53 }
 0x443   : > { %1620 = vst [vmem:[#allocation1 + $0x22] ss:$4 sm:$0xff] %v1329_v48  ;;  %1764 = vxpose.xlu2.b32.cont [3/4] (short) (narrow) %v3159_v12, 8  ;;  %v1334_v12 = vsel %vm1210_vm15, %v581_v15, %v1073_v4 }
 0x445   : > { %v1059_v51 = vpop.permute.xlu1 %1058 }
 0x446   : > { %v1327_v8 = vsel %vm1210_vm15, %v575_v56, %v1059_v51  ;;  %v1622_v43 = vld.sshfl [vmem:[#allocation1] sm:$0xff pattern:$0x73625140]  ;;  %v1075_v56 = vpop.permute.xlu0 %1074  ;;  %v1999_v51 = vunpack.c.l.s4 %v2363_v25 }
 0x447   : > { %1618 = vst [vmem:[#allocation1 + $0x20] ss:$4 sm:$0xff] %v1327_v8  ;;  %1890 = vxpose.xlu0.b32.start [1/4] (short) (narrow) %v1622_v43, 8  ;;  %v1079_v3 = vpop.permute.xlu2 %1078 }
 0x448   : > { %1624 = vst [vmem:[#allocation1] ss:$4 sm:$0xff] %v1331_v9  ;;  %v1337_v46 = vsel %vm1210_vm15, %v584_v13, %v1079_v3  ;;  %v2000_v23 = vunpack.c.0.s8 %v1999_v51 }
 0x449   : > { %1625 = vst [vmem:[#allocation1 + $0x1] ss:$4 sm:$0xff] %v1332_v18 }
 0x44a   : > { %1627 = vst [vmem:[#allocation1 + $0x3] ss:$4 sm:$0xff] %v1334_v12 }
 0x44b   : > { %1765 = vxpose.xlu2.b32.end [4/4] (short) (narrow) %v3189_v36, 8  ;;  %v1335_v36 = vsel %vm1210_vm15, %v3529_v32, %v1075_v56 }
 0x44d   : > { %v1065_v31 = vpop.permute.xlu1 %1064 }
 0x44e   : > { %v1330_v7 = vsel %vm1210_vm15, %v578_v42, %v1065_v31  ;;  %v1081_v14 = vpop.permute.xlu0 %1080  ;;  %v3530_v42 = vrot.slane %v2786_v1, 7 }
 0x44f   : > { %1621 = vst [vmem:[#allocation1 + $0x23] ss:$4 sm:$0xff] %v1330_v7 }
 0x450   : > { %v1338_v16 = vsel %vm1210_vm15, %v3530_v42, %v1081_v14 }
 0x453   : > { %1858 = vxpose.xlu2.b32.start [1/4] (short) (narrow) %v3363_v30, 8 }
 0x455   : > { %v1071_v33 = vpop.permute.xlu1 %1070 }
 0x456   : > { %v1333_v15 = vsel %vm1210_vm15, %v580_v62, %v1071_v33  ;;  %v1623_v52 = vld.sshfl [vmem:[#allocation1 + $0x20] sm:$0xff pattern:$0x73625140]  ;;  %v1746_v30 = vpop.trf.xlu0 }
 0x457   : > { %1626 = vst [vmem:[#allocation1 + $0x2] ss:$4 sm:$0xff] %v1333_v15  ;;  %1891 = vxpose.xlu0.b32.cont [2/4] (short) (narrow) %v1623_v52, 8 }
 0x458   : > { %1628 = vst [vmem:[#allocation1 + $0x20] ss:$4 sm:$0xff] %v1335_v36 }
 0x459   : > { %1630 = vst [vmem:[#allocation1 + $0x22] ss:$4 sm:$0xff] %v1337_v46 }
 0x45a   : > { %1631 = vst [vmem:[#allocation1 + $0x23] ss:$4 sm:$0xff] %v1338_v16 }
 0x45b   : > { %1859 = vxpose.xlu2.b32.cont [2/4] (short) (narrow) %v3372_v24, 8  ;;  %v1932_v24 = vrot.slane %v1746_v30, 2 }
 0x45d   : > { %v1077_v62 = vpop.permute.xlu1 %1076 }
 0x45e   : > { %v1336_v40 = vsel %vm1210_vm15, %v583_v2, %v1077_v62  ;;  %v1632_v41 = vld.sshfl [vmem:[#allocation1] sm:$0xff pattern:$0x73625140] }
 0x45f   : > { %1629 = vst [vmem:[#allocation1 + $0x21] ss:$4 sm:$0xff] %v1336_v40  ;;  %1892 = vxpose.xlu0.b32.cont [3/4] (short) (narrow) %v1632_v41, 8 }
 0x463   : > { %1860 = vxpose.xlu2.b32.cont [3/4] (short) (narrow) %v1612_v20, 8 }
 0x466   : > { %v1633_v22 = vld.sshfl [vmem:[#allocation1 + $0x20] sm:$0xff pattern:$0x73625140] }
 0x467   : > { %1893 = vxpose.xlu0.b32.end [4/4] (short) (narrow) %v1633_v22, 8 }
 0x46b   : > { %1861 = vxpose.xlu2.b32.end [4/4] (short) (narrow) %v1613_v34, 8 }
 0x476   : > { %v1810_v26 = vpop.trf.xlu0 }
 0x477   : > { %v1934_v6 = vrot.slane %v1810_v26, 2 }
 0x4ac   : > { %v1714_v2 = vpop.trf.xlu2 }
 0x4ad   : > { %v1931_v39 = vrot.slane %v1714_v2, 2 }
 0x4c4   : > { %v1682_v13 = vpop.trf.xlu1 }
 0x4c5   : > { %v1930_v17 = vrot.slane %v1682_v13, 2 }
 0x4c7   : > { %1938 = vrot.lane.b32.xlu1 %v1930_v17, %s2361_s27 }
 0x4cc   : > { %v1778_v45 = vpop.trf.xlu2 }
 0x4cd   : > { %v1933_v5 = vrot.slane %v1778_v45, 2 }
 0x4d4   : > { %1944 = vrot.lane.b32.xlu2 %v1933_v5, %s2361_s27 }
 0x4f3   : > { %v1906_v1 = vpop.trf.xlu0 }
 0x4f4   : > { %v1937_v19 = vrot.slane %v1906_v1, 2 }
 0x4f6   : > { %1952 = vrot.lane.b32.xlu0 %v1937_v19, %s2361_s27 }
 0x4fc   : > { %1826 = vxpose.xlu1.b32.start [1/4] (short) (narrow) %v3302_v28, 8 }
 0x504   : > { %1827 = vxpose.xlu1.b32.cont [2/4] (short) (narrow) %v3319_v35, 8  ;;  %v1874_v35 = vpop.trf.xlu2 }
 0x505   : > { %v1936_v63 = vrot.slane %v1874_v35, 2 }
 0x50c   : > { %1828 = vxpose.xlu1.b32.cont [3/4] (short) (narrow) %v3327_v10, 8 }
 0x514   : > { %1829 = vxpose.xlu1.b32.end [4/4] (short) (narrow) %v3344_v54, 8 }
 0x52e   : > { %v1945_v54 = vpop.permute.xlu2 %1944 }
 0x52f   : > { %v1966_v11 = vsel %vm1962_vm0, %v1778_v45, %v1945_v54 }
 0x530   : > { %v1978_v55 = vrot.slane %v1966_v11, 4 }
 0x539   : > { %v1939_v38 = vpop.permute.xlu1 %1938 }
 0x53a   : > { %v1963_v59 = vsel %vm1962_vm0, %v1682_v13, %v1939_v38 }
 0x568   : > { %v1953_v27 = vpop.permute.xlu0 %1952 }
 0x569   : > { %v1970_v0 = vsel %vm1962_vm0, %v1906_v1, %v1953_v27 }
 0x56a   : > { %v1990_v48 = vrot.slane %v1970_v0, 4 }
 0x56e   : > { %1940 = vrot.lane.b32.xlu1 %v1931_v39, %s2361_s27 }
 0x576   : > { %1942 = vrot.lane.b32.xlu1 %v1932_v24, %s2361_s27 }
 0x5a0   : > { %v1842_v28 = vpop.trf.xlu1 }
 0x5a1   : > { %v1935_v60 = vrot.slane %v1842_v28, 2 }
 0x5a3   : > { %1948 = vrot.lane.b32.xlu1 %v1935_v60, %s2361_s27 }
 0x5ab   : > { %1950 = vrot.lane.b32.xlu1 %v1936_v63, %s2361_s27 }
 0x5b3   : > { %1946 = vrot.lane.b32.xlu1 %v1934_v6, %s2361_s27 }
 0x5e0   : > { %v1941_v10 = vpop.permute.xlu1 %1940 }
 0x5e1   : > { %v1964_v20 = vsel %vm1962_vm0, %v1714_v2, %v1941_v10 }
 0x5e2   : > { %v1979_v29 = vsel %vm1972_vm1, %v1978_v55, %v1964_v20 }
 0x5e3   : > { %v1983_v34 = vperm.slane %v1979_v29, %v1976_v50 }
 0x5e5   : > { %v1996_v43 = vrot.slane %v1983_v34, 4 }
 0x5e8   : > { %v1943_v37 = vpop.permute.xlu1 %1942 }
 0x5e9   : > { %v1965_v44 = vsel %vm1962_vm0, %v1746_v30, %v1943_v37 }
 0x5ea   : > { %v1971_v49 = vrot.slane %v1965_v44, 4 }
 0x5ec   : > { %v1973_v57 = vsel %vm1972_vm1, %v1971_v49, %v1963_v59 }
 0x5ed   : > { %v1977_v4 = vperm.slane %v1973_v57, %v1976_v50 }
 0x5ef   : > { %v1997_v18 = vsel %vm1972_vm1, %v1996_v43, %v1977_v4 }
 0x5f0   : > { %v2001_v3 = vperm.slane %v1997_v18, %v2000_v23 }
 0x5f2   : > { %v2010_v32 = vrot.slane %v2001_v3, 4 }
 0x615   : > { %v1949_v47 = vpop.permute.xlu1 %1948 }
 0x616   : > { %v1968_v61 = vsel %vm1962_vm0, %v1842_v28, %v1949_v47 }
 0x617   : > { %v1991_v8 = vsel %vm1972_vm1, %v1990_v48, %v1968_v61 }
 0x618   : > { %v1995_v12 = vperm.slane %v1991_v8, %v1976_v50 }
 0x61a   : > { %v2002_v14 = vrot.slane %v1995_v12, 4 }
 0x61d   : > { %v1951_v53 = vpop.permute.xlu1 %1950 }
 0x61e   : > { %v1969_v9 = vsel %vm1962_vm0, %v1874_v35, %v1951_v53 }
 0x61f   : > { %v1984_v56 = vrot.slane %v1969_v9, 4 }
 0x625   : > { %v1947_v31 = vpop.permute.xlu1 %1946 }
 0x626   : > { %v1967_v7 = vsel %vm1962_vm0, %v1810_v26, %v1947_v31 }
 0x627   : > { %v1985_v33 = vsel %vm1972_vm1, %v1984_v56, %v1967_v7 }
 0x628   : > { %v1989_v15 = vperm.slane %v1985_v33, %v1976_v50 }
 0x62a   : > { %v2003_v52 = vsel %vm1972_vm1, %v2002_v14, %v1989_v15 }
 0x62b   : > { %v2007_v36 = vperm.slane %v2003_v52, %v2000_v23 }
 0x62c   : > { %2021 = sbr.rel (!%p2435_p5) target bundleno = 1593 (0x639), region = 40 }
 0x62d   : > { %v2008_v46 = vrot.slane %v2007_v36, 4  ;;  %v2011_v42 = vsel %vm1972_vm1, %v2007_v36, %v2010_v32 }
 0x62e   : > { %2014 = vst.msk [vmem:[%s254_s5 + $0x8] sm:$0xff] %vm2012_vm2, %v2011_v42 }
 0x62f   : > { %v2009_v16 = vsel %vm1972_vm1, %v2008_v46, %v2001_v3 }
 0x630   : > { %2013 = vst.msk [vmem:[%s254_s5] sm:$0xff] %vm2012_vm2, %v2009_v16 }
 0x635   : > { %v2058_v40 = vld [vmem:[%s254_s5 + $0x8] sm:$0xff] }
 0x636   : > { %2059 = vst [vmem:[%s2025_s10 + $0x10] sm:$0xff] %v2058_v40 }
 0x637   : > { %v2056_v62 = vld [vmem:[%s254_s5] sm:$0xff] }
 0x638   : > { %2057 = vst [vmem:[%s2025_s10] sm:$0xff] %v2056_v62 }
 0x639 PF: > { %s14_s21 = sadd.s32 1, %s2348_s21   ;;  %s3531_s15 = smov %s2328_s16 }
 0x63a   : > { %p11_p11 = scmp.ge.s32.totalorder %s14_s21, 6   ;;  %s3532_s16 = smov %s2446_s30 }
 0x63b   : > { %s3533_s17 = smov %s2340_s19  ;;  %s3534_s18 = smov %s2344_s20 }
 0x63c   : > { %s3535_s19 = smov %s3538_s22  ;;  %s3536_s20 = smov %s3542_s23 }
 0x63d   :  { %13 = sbr.rel (!%p11_p11) target bundleno = 4 (0x4), region = 117 }

</bundles_post_ra>
